<compile_context>
chip_gen: v7x
topology: tpu7x:2x2x1
jax: 0.10.0
libtpu: 0.0.40
codegen_flags: <defaults>
</compile_context>

<pallas_src>
import functools

import numpy as np
import jax
import jax.numpy as jnp
from jax import lax
from jax.experimental import pallas as pl
from jax.experimental.pallas import tpu as pltpu

_EPS = 1e-8
_LANE = 128          # channel axes are zero-padded to a multiple of this
_SUB = 16            # sublane rounding (16 -> clean bf16 packing)
_MAX_ROW_TILE = 256  # max flat spatial rows handled per grid step


def _round_up(x, m):
    return (x + m - 1) // m * m


def _apply_act(y, act):
    if act == "lrelu":                       # nn.LeakyReLU(0.2)
        return jnp.where(y >= 0.0, y, 0.2 * y)
    if act == "tanh":                        # nn.Hardtanh()
        return jnp.clip(y, -1.0, 1.0)
    return y                                 # 'linear'


# ------------------------------ Pallas kernel --------------------------------

def _conv_block_kernel(x_ref, w_ref, b_ref, o_ref, xn_ref, *,
                       offs, tg, halo, inv_c, act):
    # grid = (batch, cout_tile, row_tile); x_ref is the whole padded slab of
    # the current image (resident across the inner axes).
    t = pl.program_id(2)
    base = pl.multiple_of(t * tg, tg)

    # PixelNormLayer fused on the input window (+ halo), f32 math.
    win = x_ref[pl.ds(base, tg + halo), :].astype(jnp.float32)
    ms = jnp.sum(win * win, axis=-1, keepdims=True) * inv_c   # mean over real C
    xn_ref[...] = (win * lax.rsqrt(ms + _EPS)).astype(xn_ref.dtype)  # -> bf16

    # Conv as K*K shifted matmuls: bf16 MXU inputs, f32 accumulation.
    tcn = w_ref.shape[-1]
    acc = jnp.zeros((tg, tcn), jnp.float32)
    for i, off in enumerate(offs):                      # static unrolled taps
        acc = acc + jnp.dot(xn_ref[pl.ds(off, tg), :], w_ref[i],
                            preferred_element_type=jnp.float32)

    # WScale bias (scale already folded into the weights) + activation, f32.
    y = acc + b_ref[...]
    y = _apply_act(y, act)
    o_ref[...] = y.astype(o_ref.dtype)


# ------------------------------ host-side glue --------------------------------

def _spatial_tiling(ho, wp, k):
    """Row-tiling numbers for the flattened padded grid."""
    g = ho * wp                                   # base rows we must compute
    n_t = max(1, -(-g // _MAX_ROW_TILE))          # ceil(g / MAX_ROW_TILE)
    tg = _round_up(-(-g // n_t), _SUB)            # rows per grid step
    gb = n_t * tg                                 # padded row count (>= g)
    halo = _round_up((k - 1) * (wp + 1), _SUB)    # max tap offset, rounded
    lp = gb + halo                                # rows of the padded slab
    return n_t, tg, gb, halo, lp


def make_conv_block_params(key, in_ch, out_ch, *, kernel_size=3, padding=1,
                           add_bias=False, upsample=False, fused_scale=False,
                           wscale_gain=float(np.sqrt(2.0)),
                           activation_type="lrelu"):
    """Build ConvBlock parameters (kernel-ready padded/bf16 + raw f32 copies)."""
    if fused_scale:
        raise NotImplementedError("fused_scale=True (conv_transpose2d) TODO")
    if activation_type not in ("linear", "lrelu", "tanh"):
        raise NotImplementedError(activation_type)

    kw, kb, kc = jax.random.split(key, 3)
    w_raw = jax.random.normal(
        kw, (kernel_size, kernel_size, in_ch, out_ch), jnp.float32)   # HWIO
    wscale_bias = 0.1 * jax.random.normal(kb, (out_ch,), jnp.float32)
    conv_bias = (0.1 * jax.random.normal(kc, (out_ch,), jnp.float32)
                 if add_bias else None)

    fan_in = in_ch * kernel_size * kernel_size
    scale = float(wscale_gain / np.sqrt(fan_in))

    cin_pad = _round_up(in_ch, _LANE)
    cout_pad = _round_up(out_ch, _LANE)

    # Fold the wscale constant into the weights; pad to lane-dense shapes; bf16.
    w_scaled = (w_raw * scale).reshape(kernel_size * kernel_size, in_ch, out_ch)
    w_kernel = jnp.zeros((kernel_size * kernel_size, cin_pad, cout_pad),
                         jnp.bfloat16)
    w_kernel = w_kernel.at[:, :in_ch, :out_ch].set(w_scaled.astype(jnp.bfloat16))

    # (conv + b_conv) * scale + b_wscale  ==  conv*scale + (scale*b_conv + b_w)
    bias_eff = wscale_bias + (scale * conv_bias if add_bias else 0.0)
    b_kernel = jnp.zeros((1, cout_pad), jnp.float32)
    b_kernel = b_kernel.at[0, :out_ch].set(bias_eff)

    return dict(
        in_ch=in_ch, out_ch=out_ch, k=kernel_size, pad=padding,
        upsample=upsample, act=activation_type,
        cin_pad=cin_pad, cout_pad=cout_pad,
        w=w_kernel, b=b_kernel,
        # raw copies used only by the pure-JAX reference
        w_raw=w_raw, wscale_bias=wscale_bias, conv_bias=conv_bias, scale=scale)


def conv_block_forward(x_nchw, p):
    """ConvBlock.forward: pixel_norm -> (2x nearest upsample) -> conv -> wscale -> act."""
    B, C, H, W = x_nchw.shape
    assert C == p["in_ch"], (C, p["in_ch"])
    x = jnp.transpose(x_nchw, (0, 2, 3, 1)).astype(jnp.float32)       # NHWC

    # Nearest 2x upsample (pixel-norm is per-position, so doing it after the
    # replication inside the kernel is mathematically identical).
    if p["upsample"]:
        x = jnp.repeat(jnp.repeat(x, 2, axis=1), 2, axis=2)

    Hs, Ws = x.shape[1], x.shape[2]
    k, pad = p["k"], p["pad"]
    Hp, Wp = Hs + 2 * pad, Ws + 2 * pad
    Ho, Wo = Hp - k + 1, Wp - k + 1
    cin_pad, cout_pad = p["cin_pad"], p["cout_pad"]

    # Spatial zero-pad + channel zero-pad + flatten to the per-image slab.
    xp = jnp.pad(x, ((0, 0), (pad, pad), (pad, pad), (0, cin_pad - C)))
    xf = xp.reshape(B, Hp * Wp, cin_pad)

    n_t, tg, gb, halo, lp = _spatial_tiling(Ho, Wp, k)
    xf = jnp.pad(xf, ((0, 0), (0, lp - Hp * Wp), (0, 0)))

    tcn = cout_pad if cout_pad <= 512 else _LANE
    n_jc = cout_pad // tcn
    offs = tuple(di * Wp + dj for di in range(k) for dj in range(k))

    kern = functools.partial(_conv_block_kernel, offs=offs, tg=tg, halo=halo,
                             inv_c=1.0 / C, act=p["act"])

    out = pl.pallas_call(
        kern,
        out_shape=jax.ShapeDtypeStruct((B, gb, cout_pad), jnp.float32),
        grid=(B, n_jc, n_t),
        in_specs=[
            pl.BlockSpec((None, lp, cin_pad), lambda b, jc, t: (b, 0, 0)),
            pl.BlockSpec((k * k, cin_pad, tcn), lambda b, jc, t: (0, 0, jc)),
            pl.BlockSpec((1, tcn), lambda b, jc, t: (0, jc)),
        ],
        out_specs=pl.BlockSpec((None, tg, tcn), lambda b, jc, t: (b, t, jc)),
        scratch_shapes=[pltpu.VMEM((tg + halo, cin_pad), jnp.bfloat16)],
        compiler_params=pltpu.CompilerParams(
            dimension_semantics=("parallel", "parallel", "arbitrary"),
            vmem_limit_bytes=32 * 1024 * 1024),
    )(xf, p["w"], p["b"])

    # Drop garbage rows / padded channels, un-flatten, back to NCHW.
    y = out[:, :Ho * Wp, :p["out_ch"]]
    y = y.reshape(B, Ho, Wp, p["out_ch"])[:, :, :Wo, :]
    return jnp.transpose(y, (0, 3, 1, 2))


# --------------------------- pure-JAX references -------------------------------

def conv_block_reference(x_nchw, p, *, match_kernel_quant):
    """Mirror of the PyTorch ConvBlock forward.  With match_kernel_quant=True it
    uses the same bf16 MXU inputs / f32 accumulation as the Pallas kernel."""
    x = jnp.transpose(x_nchw, (0, 2, 3, 1)).astype(jnp.float32)       # NHWC
    xn = x / jnp.sqrt(jnp.mean(x * x, axis=-1, keepdims=True) + _EPS)  # PixelNorm
    if p["upsample"]:
        xn = jnp.repeat(jnp.repeat(xn, 2, axis=1), 2, axis=2)
    k, pad = p["k"], p["pad"]
    pad2 = [(pad, pad), (pad, pad)]
    if match_kernel_quant:
        w = p["w"][:, :p["in_ch"], :p["out_ch"]].reshape(
            k, k, p["in_ch"], p["out_ch"])                     # bf16, scale folded
        y = lax.conv_general_dilated(
            xn.astype(jnp.bfloat16), w, (1, 1), pad2,
            dimension_numbers=("NHWC", "HWIO", "NHWC"),
            preferred_element_type=jnp.float32)
        y = y + p["b"][0, :p["out_ch"]]
    else:
        y = lax.conv_general_dilated(
            xn, p["w_raw"], (1, 1), pad2,
            dimension_numbers=("NHWC", "HWIO", "NHWC"))
        if p["conv_bias"] is not None:
            y = y + p["conv_bias"]
        y = y * p["scale"] + p["wscale_bias"]
    y = _apply_act(y, p["act"])
    return jnp.transpose(y, (0, 3, 1, 2))


# ----------------------------------- main --------------------------------------

if __name__ == "__main__":
    root = jax.random.PRNGKey(0)
    batch = 2
    configs = [
        # (name, in_ch, out_ch, k, pad, upsample, add_bias, gain, act, spatial)
        ("conv3x3_lrelu",      32, 32, 3, 1, False, False, float(np.sqrt(2.0)), "lrelu", 16),
        ("up2x_conv3x3_lrelu", 32, 64, 3, 1, True,  False, float(np.sqrt(2.0)), "lrelu",  8),
        ("to_rgb_1x1_linear",  32,  3, 1, 0, False, False, 1.0,                 "linear", 16),
        ("conv3x3_bias_tanh",  16, 32, 3, 1, False, True,  float(np.sqrt(2.0)), "tanh",  16),
    ]

    key = root
    for (name, cin, cout, k, pad, up, add_bias, gain, act, hw) in configs:
        key, kp, kx = jax.random.split(key, 3)
        params = make_conv_block_params(
            kp, cin, cout, kernel_size=k, padding=pad, add_bias=add_bias,
            upsample=up, wscale_gain=gain, activation_type=act)
        x = jax.random.normal(kx, (batch, cin, hw, hw), jnp.float32)

        fwd = jax.jit(functools.partial(conv_block_forward, p=params))
        y = fwd(x)
        jax.block_until_ready(y)

        out_hw = hw * 2 if up else hw
        assert y.shape == (batch, cout, out_hw, out_hw), (name, y.shape)

        y_np = np.asarray(y)
        # Exact-semantics reference (same bf16 MXU inputs, f32 accumulation).
        y_match = np.asarray(
            conv_block_reference(x, params, match_kernel_quant=True))
        np.testing.assert_allclose(
            y_np, y_match, rtol=5e-3, atol=5e-3,
            err_msg=f"{name}: mismatch vs bf16-matched reference")
        # PyTorch-faithful f32 reference (looser: bf16 MXU input quantization).
        y_f32 = np.asarray(
            conv_block_reference(x, params, match_kernel_quant=False))
        np.testing.assert_allclose(
            y_np, y_f32, rtol=5e-2, atol=5e-2,
            err_msg=f"{name}: mismatch vs f32 reference")

    print("KERNEL_OK")
</pallas_src>

<mosaic_0001>
module attributes {stable_mosaic.version = 11 : i64} {
  func.func @_conv_block_kernel(%arg0: i32, %arg1: i32, %arg2: i32, %arg3: memref<1x336x128xf32, #tpu.memory_space<vmem>>, %arg4: memref<9x128x128xbf16, #tpu.memory_space<vmem>>, %arg5: memref<1x128xf32, #tpu.memory_space<vmem>>, %arg6: memref<1x144x128xf32, #tpu.memory_space<vmem>>, %arg7: memref<192x128xbf16, #tpu.memory_space<vmem>>) attributes {dimension_semantics = [#tpu.dimension_semantics<parallel>, #tpu.dimension_semantics<parallel>, #tpu.dimension_semantics<arbitrary>], iteration_bounds = array<i64: 2, 1, 2>, scalar_prefetch = 0 : i64, scratch_operands = 1 : i64, tpu.core_type = #tpu.core_type<tc>, window_params = [{transform_indices = @transform_0, window_bounds = array<i64: 1, 336, 128>}, {transform_indices = @transform_1, window_bounds = array<i64: 9, 128, 128>}, {transform_indices = @transform_2, window_bounds = array<i64: 1, 128>}, {transform_indices = @transform_3, window_bounds = array<i64: 1, 144, 128>}]} {
    %c144_i32 = arith.constant 144 : i32
    %0 = arith.muli %arg2, %c144_i32 : i32
    %1 = tpu.assume_multiple %0, 144 : i32
    %c0 = arith.constant 0 : index
    %2 = arith.index_cast %1 : i32 to index
    %c0_0 = arith.constant 0 : index
    %3 = vector.load %arg3[%c0, %2, %c0_0] : memref<1x336x128xf32, #tpu.memory_space<vmem>>, vector<1x192x128xf32>
    %4 = vector.shape_cast %3 : vector<1x192x128xf32> to vector<192x128xf32>
    %5 = arith.mulf %4, %4 : vector<192x128xf32>
    %cst = arith.constant dense<0.000000e+00> : vector<192xf32>
    %6 = vector.multi_reduction <add>, %5, %cst [1] : vector<192x128xf32> to vector<192xf32>
    %7 = vector.shape_cast %6 : vector<192xf32> to vector<192x1xf32>
    %cst_1 = arith.constant 3.125000e-02 : f32
    %8 = vector.broadcast %cst_1 : f32 to vector<192x1xf32>
    %9 = arith.mulf %7, %8 : vector<192x1xf32>
    %cst_2 = arith.constant 9.99999993E-9 : f32
    %10 = vector.broadcast %cst_2 : f32 to vector<192x1xf32>
    %11 = arith.addf %9, %10 : vector<192x1xf32>
    %12 = math.rsqrt %11 : vector<192x1xf32>
    %13 = vector.broadcast %12 : vector<192x1xf32> to vector<192x128xf32>
    %14 = arith.mulf %4, %13 : vector<192x128xf32>
    %15 = arith.truncf %14 : vector<192x128xf32> to vector<192x128xbf16>
    %c0_3 = arith.constant 0 : index
    %c0_4 = arith.constant 0 : index
    %16 = vector.load %arg7[%c0_3, %c0_4] : memref<192x128xbf16, #tpu.memory_space<vmem>>, vector<192x128xbf16>
    tpu.vector_store %arg7[%c0_3, %c0_4], %15 {strides = array<i32>} : memref<192x128xbf16, #tpu.memory_space<vmem>>, vector<192x128xbf16>,
    %cst_5 = arith.constant 0.000000e+00 : f32
    %17 = vector.broadcast %cst_5 : f32 to vector<144x128xf32>
    %c0_6 = arith.constant 0 : index
    %c0_7 = arith.constant 0 : index
    %18 = vector.load %arg7[%c0_6, %c0_7] : memref<192x128xbf16, #tpu.memory_space<vmem>>, vector<144x128xbf16>
    %c0_8 = arith.constant 0 : index
    %c0_9 = arith.constant 0 : index
    %c0_10 = arith.constant 0 : index
    %19 = vector.load %arg4[%c0_8, %c0_9, %c0_10] : memref<9x128x128xbf16, #tpu.memory_space<vmem>>, vector<1x128x128xbf16>
    %20 = vector.shape_cast %19 : vector<1x128x128xbf16> to vector<128x128xbf16>
    %cst_11 = arith.constant dense<0.000000e+00> : vector<144x128xf32>
    %21 = tpu.matmul %18, %20, %cst_11 {dimension_numbers = #tpu.dot_dimension_numbers<[1], [0], [0], [1], [0, 0, 1, 1], [], []>} : vector<144x128xbf16>, vector<128x128xbf16>, vector<144x128xf32> -> vector<144x128xf32>
    %22 = arith.addf %17, %21 : vector<144x128xf32>
    %c1 = arith.constant 1 : index
    %c0_12 = arith.constant 0 : index
    %23 = vector.load %arg7[%c1, %c0_12] : memref<192x128xbf16, #tpu.memory_space<vmem>>, vector<144x128xbf16>
    %c1_13 = arith.constant 1 : index
    %c0_14 = arith.constant 0 : index
    %c0_15 = arith.constant 0 : index
    %24 = vector.load %arg4[%c1_13, %c0_14, %c0_15] : memref<9x128x128xbf16, #tpu.memory_space<vmem>>, vector<1x128x128xbf16>
    %25 = vector.shape_cast %24 : vector<1x128x128xbf16> to vector<128x128xbf16>
    %cst_16 = arith.constant dense<0.000000e+00> : vector<144x128xf32>
    %26 = tpu.matmul %23, %25, %cst_16 {dimension_numbers = #tpu.dot_dimension_numbers<[1], [0], [0], [1], [0, 0, 1, 1], [], []>} : vector<144x128xbf16>, vector<128x128xbf16>, vector<144x128xf32> -> vector<144x128xf32>
    %27 = arith.addf %22, %26 : vector<144x128xf32>
    %c2 = arith.constant 2 : index
    %c0_17 = arith.constant 0 : index
    %28 = vector.load %arg7[%c2, %c0_17] : memref<192x128xbf16, #tpu.memory_space<vmem>>, vector<144x128xbf16>
    %c2_18 = arith.constant 2 : index
    %c0_19 = arith.constant 0 : index
    %c0_20 = arith.constant 0 : index
    %29 = vector.load %arg4[%c2_18, %c0_19, %c0_20] : memref<9x128x128xbf16, #tpu.memory_space<vmem>>, vector<1x128x128xbf16>
    %30 = vector.shape_cast %29 : vector<1x128x128xbf16> to vector<128x128xbf16>
    %cst_21 = arith.constant dense<0.000000e+00> : vector<144x128xf32>
    %31 = tpu.matmul %28, %30, %cst_21 {dimension_numbers = #tpu.dot_dimension_numbers<[1], [0], [0], [1], [0, 0, 1, 1], [], []>} : vector<144x128xbf16>, vector<128x128xbf16>, vector<144x128xf32> -> vector<144x128xf32>
    %32 = arith.addf %27, %31 : vector<144x128xf32>
    %c18 = arith.constant 18 : index
    %c0_22 = arith.constant 0 : index
    %33 = vector.load %arg7[%c18, %c0_22] : memref<192x128xbf16, #tpu.memory_space<vmem>>, vector<144x128xbf16>
    %c3 = arith.constant 3 : index
    %c0_23 = arith.constant 0 : index
    %c0_24 = arith.constant 0 : index
    %34 = vector.load %arg4[%c3, %c0_23, %c0_24] : memref<9x128x128xbf16, #tpu.memory_space<vmem>>, vector<1x128x128xbf16>
    %35 = vector.shape_cast %34 : vector<1x128x128xbf16> to vector<128x128xbf16>
    %cst_25 = arith.constant dense<0.000000e+00> : vector<144x128xf32>
    %36 = tpu.matmul %33, %35, %cst_25 {dimension_numbers = #tpu.dot_dimension_numbers<[1], [0], [0], [1], [0, 0, 1, 1], [], []>} : vector<144x128xbf16>, vector<128x128xbf16>, vector<144x128xf32> -> vector<144x128xf32>
    %37 = arith.addf %32, %36 : vector<144x128xf32>
    %c19 = arith.constant 19 : index
    %c0_26 = arith.constant 0 : index
    %38 = vector.load %arg7[%c19, %c0_26] : memref<192x128xbf16, #tpu.memory_space<vmem>>, vector<144x128xbf16>
    %c4 = arith.constant 4 : index
    %c0_27 = arith.constant 0 : index
    %c0_28 = arith.constant 0 : index
    %39 = vector.load %arg4[%c4, %c0_27, %c0_28] : memref<9x128x128xbf16, #tpu.memory_space<vmem>>, vector<1x128x128xbf16>
    %40 = vector.shape_cast %39 : vector<1x128x128xbf16> to vector<128x128xbf16>
    %cst_29 = arith.constant dense<0.000000e+00> : vector<144x128xf32>
    %41 = tpu.matmul %38, %40, %cst_29 {dimension_numbers = #tpu.dot_dimension_numbers<[1], [0], [0], [1], [0, 0, 1, 1], [], []>} : vector<144x128xbf16>, vector<128x128xbf16>, vector<144x128xf32> -> vector<144x128xf32>
    %42 = arith.addf %37, %41 : vector<144x128xf32>
    %c20 = arith.constant 20 : index
    %c0_30 = arith.constant 0 : index
    %43 = vector.load %arg7[%c20, %c0_30] : memref<192x128xbf16, #tpu.memory_space<vmem>>, vector<144x128xbf16>
    %c5 = arith.constant 5 : index
    %c0_31 = arith.constant 0 : index
    %c0_32 = arith.constant 0 : index
    %44 = vector.load %arg4[%c5, %c0_31, %c0_32] : memref<9x128x128xbf16, #tpu.memory_space<vmem>>, vector<1x128x128xbf16>
    %45 = vector.shape_cast %44 : vector<1x128x128xbf16> to vector<128x128xbf16>
    %cst_33 = arith.constant dense<0.000000e+00> : vector<144x128xf32>
    %46 = tpu.matmul %43, %45, %cst_33 {dimension_numbers = #tpu.dot_dimension_numbers<[1], [0], [0], [1], [0, 0, 1, 1], [], []>} : vector<144x128xbf16>, vector<128x128xbf16>, vector<144x128xf32> -> vector<144x128xf32>
    %47 = arith.addf %42, %46 : vector<144x128xf32>
    %c36 = arith.constant 36 : index
    %c0_34 = arith.constant 0 : index
    %48 = vector.load %arg7[%c36, %c0_34] : memref<192x128xbf16, #tpu.memory_space<vmem>>, vector<144x128xbf16>
    %c6 = arith.constant 6 : index
    %c0_35 = arith.constant 0 : index
    %c0_36 = arith.constant 0 : index
    %49 = vector.load %arg4[%c6, %c0_35, %c0_36] : memref<9x128x128xbf16, #tpu.memory_space<vmem>>, vector<1x128x128xbf16>
    %50 = vector.shape_cast %49 : vector<1x128x128xbf16> to vector<128x128xbf16>
    %cst_37 = arith.constant dense<0.000000e+00> : vector<144x128xf32>
    %51 = tpu.matmul %48, %50, %cst_37 {dimension_numbers = #tpu.dot_dimension_numbers<[1], [0], [0], [1], [0, 0, 1, 1], [], []>} : vector<144x128xbf16>, vector<128x128xbf16>, vector<144x128xf32> -> vector<144x128xf32>
    %52 = arith.addf %47, %51 : vector<144x128xf32>
    %c37 = arith.constant 37 : index
    %c0_38 = arith.constant 0 : index
    %53 = vector.load %arg7[%c37, %c0_38] : memref<192x128xbf16, #tpu.memory_space<vmem>>, vector<144x128xbf16>
    %c7 = arith.constant 7 : index
    %c0_39 = arith.constant 0 : index
    %c0_40 = arith.constant 0 : index
    %54 = vector.load %arg4[%c7, %c0_39, %c0_40] : memref<9x128x128xbf16, #tpu.memory_space<vmem>>, vector<1x128x128xbf16>
    %55 = vector.shape_cast %54 : vector<1x128x128xbf16> to vector<128x128xbf16>
    %cst_41 = arith.constant dense<0.000000e+00> : vector<144x128xf32>
    %56 = tpu.matmul %53, %55, %cst_41 {dimension_numbers = #tpu.dot_dimension_numbers<[1], [0], [0], [1], [0, 0, 1, 1], [], []>} : vector<144x128xbf16>, vector<128x128xbf16>, vector<144x128xf32> -> vector<144x128xf32>
    %57 = arith.addf %52, %56 : vector<144x128xf32>
    %c38 = arith.constant 38 : index
    %c0_42 = arith.constant 0 : index
    %58 = vector.load %arg7[%c38, %c0_42] : memref<192x128xbf16, #tpu.memory_space<vmem>>, vector<144x128xbf16>
    %c8 = arith.constant 8 : index
    %c0_43 = arith.constant 0 : index
    %c0_44 = arith.constant 0 : index
    %59 = vector.load %arg4[%c8, %c0_43, %c0_44] : memref<9x128x128xbf16, #tpu.memory_space<vmem>>, vector<1x128x128xbf16>
    %60 = vector.shape_cast %59 : vector<1x128x128xbf16> to vector<128x128xbf16>
    %cst_45 = arith.constant dense<0.000000e+00> : vector<144x128xf32>
    %61 = tpu.matmul %58, %60, %cst_45 {dimension_numbers = #tpu.dot_dimension_numbers<[1], [0], [0], [1], [0, 0, 1, 1], [], []>} : vector<144x128xbf16>, vector<128x128xbf16>, vector<144x128xf32> -> vector<144x128xf32>
    %62 = arith.addf %57, %61 : vector<144x128xf32>
    %c0_46 = arith.constant 0 : index
    %c0_47 = arith.constant 0 : index
    %63 = vector.load %arg5[%c0_46, %c0_47] : memref<1x128xf32, #tpu.memory_space<vmem>>, vector<1x128xf32>
    %64 = vector.broadcast %63 : vector<1x128xf32> to vector<144x128xf32>
    %65 = arith.addf %62, %64 : vector<144x128xf32>
    %cst_48 = arith.constant 0.000000e+00 : f32
    %66 = vector.broadcast %cst_48 : f32 to vector<144x128xf32>
    %67 = arith.cmpf oge, %65, %66 : vector<144x128xf32>
    %cst_49 = arith.constant 2.000000e-01 : f32
    %68 = vector.broadcast %cst_49 : f32 to vector<144x128xf32>
    %69 = arith.mulf %68, %65 : vector<144x128xf32>
    %70 = arith.select %67, %65, %69 : vector<144x128xi1>, vector<144x128xf32>
    %c0_50 = arith.constant 0 : index
    %c0_51 = arith.constant 0 : index
    %c0_52 = arith.constant 0 : index
    %71 = vector.load %arg6[%c0_50, %c0_51, %c0_52] : memref<1x144x128xf32, #tpu.memory_space<vmem>>, vector<1x144x128xf32>
    %72 = vector.shape_cast %71 : vector<1x144x128xf32> to vector<144x128xf32>
    %73 = vector.shape_cast %70 : vector<144x128xf32> to vector<1x144x128xf32>
    tpu.vector_store %arg6[%c0_50, %c0_51, %c0_52], %73 {strides = array<i32>} : memref<1x144x128xf32, #tpu.memory_space<vmem>>, vector<1x144x128xf32>,
    return
  }
  func.func @transform_0(%arg0: i32, %arg1: i32, %arg2: i32) -> (i32, i32, i32) {
    %c0_i32 = arith.constant 0 : i32
    %c0_i32_0 = arith.constant 0 : i32
    %c0_i32_1 = arith.constant 0 : i32
    return %arg0, %c0_i32, %c0_i32_0 : i32, i32, i32
  }
  func.func @transform_1(%arg0: i32, %arg1: i32, %arg2: i32) -> (i32, i32, i32) {
    %c0_i32 = arith.constant 0 : i32
    %c0_i32_0 = arith.constant 0 : i32
    %c0_i32_1 = arith.constant 0 : i32
    return %c0_i32, %c0_i32_0, %arg1 : i32, i32, i32
  }
  func.func @transform_2(%arg0: i32, %arg1: i32, %arg2: i32) -> (i32, i32) {
    %c0_i32 = arith.constant 0 : i32
    %c0_i32_0 = arith.constant 0 : i32
    return %c0_i32, %arg1 : i32, i32
  }
  func.func @transform_3(%arg0: i32, %arg1: i32, %arg2: i32) -> (i32, i32, i32) {
    %c0_i32 = arith.constant 0 : i32
    return %arg0, %arg2, %arg1 : i32, i32, i32
  }
}

</mosaic_0001>

<bundles_post_ra>
// kernel: conv_block_forward.1
= control target key start
LH: loop header
LB: loop body
LE: loop exit
PB: predicated region body
PF: predicated region fallthrough
CT: control target
= control target key end

     0   :  { %s3908_s12 = smov 0   ;;  %s3910_s13 = smov 0   ;;  %s5234_s0 = inlined_call_operand.vmem [shape: f32[2,336,128], index: 0, kind: input, shape index: {}]   ;;  %s5235_s1 = inlined_call_operand.vmem [shape: bf16[9,128,128], index: 1, kind: input, shape index: {}]   ;;  %s5236_s2 = inlined_call_operand.vmem [shape: f32[1,128], index: 2, kind: input, shape index: {}]   ;;  %s5237_s3 = inlined_call_operand.vmem [shape: f32[2,288,128], index: 3, kind: output, shape index: {}]  }
   0x1   :  { %s3912_s14 = smov 0   ;;  %s3914_s15 = smov 0  }
   0x2   :  { %s3916_s16 = smov 0  }
   0x3 LB: > { %s25_s17 = sadd.s32 1, %s3876_s14  ;;  %s32_s18 = sadd.s32 1, %s3880_s15  ;;  %s3884_s16 = sphi %s3916_s16, %s13_s16   ;;  %s3880_s15 = sphi %s3914_s15, %s5281_s15   ;;  %s3876_s14 = sphi %s3912_s14, %s5280_s14   ;;  %s3872_s13 = sphi %s3910_s13, %s5279_s13   ;;  %s3868_s12 = sphi %s3908_s12, %s5278_s12  }
   0x4   : > { %p26_p0 = scmp.ge.s32.totalorder %s25_s17, 2  ;;  %p2839_p1 = scmp.ge.s32.totalorder %s3884_s16, 1 }
   0x5   : > { %p177_p2 = scmp.lt.s32.totalorder %s3884_s16, 5 }
   0x6   : > { %s5283_s17 = smov (%p26_p0, %s25_s17), 0  ;;  %s5285_s18 = smov (!%p26_p0, %s32_s18), %s3880_s15 }
   0x7   : > { %p178_p3 = pnand %p2839_p1, %p177_p2  ;;  %p34_p4 = scmp.ge.s32.totalorder %s5285_s18, 2 }
   0x9   : > { %s5287_s18 = smov (%p34_p4, %s5285_s18), 0  ;;  %181 = sbr.rel (%p178_p3) target bundleno = 749 (0x2ed), region = 32 }
  0x10   : > { %p215_p5 = scmp.lt.s32.totalorder %s3872_s13, 1  ;;  %s241_s19 = smul.u32 144, %s3868_s12  ;;  %v3726_v22 = vld [vmem:[%s5235_s1 + $0x40] sm:$0xff]   ;;  %v3886_v23 = vmov 0.0   ;;  %v3727_v28 = vld [vmem:[%s5235_s1 + $0x48] sm:$0xff]   ;;  %v3728_v33 = vld [vmem:[%s5235_s1 + $0x50] sm:$0xff]  }
  0x11   : > { %3666 = vmatprep.subr.bf16.mxu1 %v3886_v23  ;;  %3198 = vmatprep.subr.bf16.mxu0 %v3886_v23  ;;  %v3729_v38 = vld [vmem:[%s5235_s1 + $0x58] sm:$0xff]   ;;  %v3730_v43 = vld [vmem:[%s5235_s1 + $0x60] sm:$0xff]   ;;  %v3731_v48 = vld [vmem:[%s5235_s1 + $0x68] sm:$0xff]   ;;  %vm3887_vm0 = vmmov 0   ;;  %vm502_vm1 = vsmask.f32 7424 }
  0x12   : > { %s5289_s13 = smov (!%p215_p5, %s3872_s13), 1  ;;  %3674 = vmatpush3.bf16.msra.mxu1 %v3726_v22  ;;  %3199 = vmatpush3.bf16.msra.mxu0 %v3726_v22  ;;  %v3732_v51 = vld [vmem:[%s5235_s1 + $0x70] sm:$0xff]   ;;  %v3733_v52 = vld [vmem:[%s5235_s1 + $0x78] sm:$0xff]   ;;  %vm922_vm2 = vcmask 1046528   ;;  %vm1376_vm3 = vsmask.f32 6400 }
  0x13   : > { %s3682_s20 = smul.u32 336, %s5289_s13  ;;  %3667 = vmatprep.subr.bf16.mxu1 %v3886_v23  ;;  %3200 = vmatprep.subr.bf16.mxu0 %v3886_v23  ;;  %vm1666_vm4 = vcmask 1045504   ;;  %vm2410_vm5 = vcmask 1044480   ;;  %vm2120_vm6 = vsmask.f32 5376 }
  0x14   : > { %3230 = vmatprep.mubr.msk.bf16.mxu1 %vm3887_vm0, %v3886_v23  ;;  %3214 = vmatprep.mubr.msk.bf16.mxu0 %vm3887_vm0, %v3886_v23  ;;  %s227_s29 = smul.u32 18, %s3868_s12 }
  0x15   : > { %s219_s23 = scalar_lea.vmem %s5234_s0, %s3682_s20  ;;  %s3683_s30 = smul.u32 36, %s5289_s13 }
  0x16   : > { %s3947_s24 = scalar_lea.vmem %s219_s23, %s241_s19  ;;  %3675 = vmatpush3.bf16.msra.mxu1 %v3727_v28  ;;  %3201 = vmatpush3.bf16.msra.mxu0 %v3727_v28  ;;  %p230_p6 = scmp.lt.s32.totalorder %s227_s29, 35 }
  0x17   : > { %v3950_v0 = vld [vmem:[%s3947_s24 + $0x50] sm:$0xff]  ;;  %v3953_v1 = vld [vmem:[%s3947_s24 + $0x40] sm:$0xff]  ;;  %v3956_v2 = vld [vmem:[%s3947_s24 + $0x58] sm:$0xff]  ;;  %3668 = vmatprep.subr.bf16.mxu1 %v3886_v23  ;;  %3202 = vmatprep.subr.bf16.mxu0 %v3886_v23 }
  0x18   : > { %v277_v3 = vmul.f32 %v3950_v0, %v3950_v0  ;;  %v275_v4 = vmul.f32 %v3953_v1, %v3953_v1  ;;  %v3963_v5 = vld [vmem:[%s3947_s24 + $0x48] sm:$0xff]  ;;  %v278_v6 = vmul.f32 %v3956_v2, %v3956_v2  ;;  %v3973_v9 = vld [vmem:[%s3947_s24] sm:$0xff]  ;;  %v3986_v14 = vld [vmem:[%s3947_s24 + $0x18] sm:$0xff]  ;;  %s5291_s29 = smov (!%p230_p6, %s227_s29), 35 }
  0x19   : > { %v276_v7 = vmul.f32 %v3963_v5, %v3963_v5  ;;  %v3970_v8 = vld [vmem:[%s3947_s24 + $0x8] sm:$0xff]  ;;  %v267_v12 = vmul.f32 %v3973_v9, %v3973_v9  ;;  %v3983_v13 = vld [vmem:[%s3947_s24 + $0x60] sm:$0xff]  ;;  %v3989_v15 = vld [vmem:[%s3947_s24 + $0x10] sm:$0xff]  ;;  %v270_v20 = vmul.f32 %v3986_v14, %v3986_v14  ;;  %s236_s12 = sadd.s32 %s3683_s30, %s5291_s29 }
  0x1a   : > { %311 = vadd.xlane.f32.xlu1 %v277_v3  ;;  %307 = vadd.xlane.f32.xlu0 %v275_v4  ;;  %v3976_v10 = vld [vmem:[%s3947_s24 + $0x68] sm:$0xff]  ;;  %v268_v11 = vmul.f32 %v3970_v8, %v3970_v8  ;;  %v279_v17 = vmul.f32 %v3983_v13, %v3983_v13  ;;  %v3996_v18 = vld [vmem:[%s3947_s24 + $0x78] sm:$0xff]  ;;  %v3999_v19 = vld [vmem:[%s3947_s24 + $0x70] sm:$0xff]  ;;  %v269_v21 = vmul.f32 %v3989_v15, %v3989_v15  ;;  %s2841_s13 = sshll.u32 %s236_s12, 3 }
  0x1b   : > { %v280_v16 = vmul.f32 %v3976_v10, %v3976_v10  ;;  %v4011_v24 = vld [vmem:[%s3947_s24 + $0x28] sm:$0xff]  ;;  %v4014_v25 = vld [vmem:[%s3947_s24 + $0x20] sm:$0xff]  ;;  %v282_v26 = vmul.f32 %v3996_v18, %v3996_v18  ;;  %v281_v27 = vmul.f32 %v3999_v19, %v3999_v19  ;;  %3676 = vmatpush3.bf16.msra.mxu1 %v3728_v33  ;;  %3203 = vmatpush3.bf16.msra.mxu0 %v3728_v33  ;;  %v4041_v34 = vld [vmem:[%s3947_s24 + $0x38] sm:$0xff]  ;;  %s5166_s8 = scalar_lea.vmem %s5237_s3, %s2841_s13 }
  0x1c   : > { %v4026_v29 = vld [vmem:[%s3947_s24 + $0x88] sm:$0xff]  ;;  %v4029_v30 = vld [vmem:[%s3947_s24 + $0x80] sm:$0xff]  ;;  %v272_v31 = vmul.f32 %v4011_v24, %v4011_v24  ;;  %v271_v32 = vmul.f32 %v4014_v25, %v4014_v25  ;;  %v4044_v35 = vld [vmem:[%s3947_s24 + $0x30] sm:$0xff]  ;;  %3669 = vmatprep.subr.bf16.mxu1 %v3886_v23  ;;  %3204 = vmatprep.subr.bf16.mxu0 %v3886_v23  ;;  %v274_v41 = vmul.f32 %v4041_v34, %v4041_v34 }
  0x1d   : > { %v284_v36 = vmul.f32 %v4026_v29, %v4026_v29  ;;  %v283_v37 = vmul.f32 %v4029_v30, %v4029_v30  ;;  %v4056_v39 = vld [vmem:[%s3947_s24 + $0x98] sm:$0xff]  ;;  %v4059_v40 = vld [vmem:[%s3947_s24 + $0x90] sm:$0xff]  ;;  %v273_v42 = vmul.f32 %v4044_v35, %v4044_v35  ;;  %v4071_v44 = vld [vmem:[%s3947_s24 + $0xa8] sm:$0xff] }
  0x1e   : > { %313 = vadd.xlane.f32.xlu1 %v278_v6  ;;  %309 = vadd.xlane.f32.xlu0 %v276_v7  ;;  %v4074_v45 = vld [vmem:[%s3947_s24 + $0xa0] sm:$0xff]  ;;  %v286_v46 = vmul.f32 %v4056_v39, %v4056_v39  ;;  %v285_v47 = vmul.f32 %v4059_v40, %v4059_v40  ;;  %v288_v49 = vmul.f32 %v4071_v44, %v4071_v44  ;;  %v4106_v53 = vld [vmem:[%s3947_s24 + $0xb8] sm:$0xff]  ;;  %v4109_v54 = vld [vmem:[%s3947_s24 + $0xb0] sm:$0xff] }
  0x1f   : > { %3677 = vmatpush3.bf16.msra.mxu1 %v3729_v38  ;;  %3205 = vmatpush3.bf16.msra.mxu0 %v3729_v38  ;;  %v287_v50 = vmul.f32 %v4074_v45, %v4074_v45  ;;  %v290_v55 = vmul.f32 %v4106_v53, %v4106_v53  ;;  %v289_v56 = vmul.f32 %v4109_v54, %v4109_v54 }
  0x20   : > { %3670 = vmatprep.subr.bf16.mxu1 %v3886_v23  ;;  %3206 = vmatprep.subr.bf16.mxu0 %v3886_v23 }
  0x22   : > { %293 = vadd.xlane.f32.xlu1 %v268_v11  ;;  %291 = vadd.xlane.f32.xlu0 %v267_v12 }
  0x23   : > { %3678 = vmatpush3.bf16.msra.mxu1 %v3730_v43  ;;  %3207 = vmatpush3.bf16.msra.mxu0 %v3730_v43 }
  0x24   : > { %3671 = vmatprep.subr.bf16.mxu1 %v3886_v23  ;;  %3208 = vmatprep.subr.bf16.mxu0 %v3886_v23 }
  0x26   : > { %317 = vadd.xlane.f32.xlu1 %v280_v16  ;;  %315 = vadd.xlane.f32.xlu0 %v279_v17 }
  0x27   : > { %3679 = vmatpush3.bf16.msra.mxu1 %v3731_v48  ;;  %3209 = vmatpush3.bf16.msra.mxu0 %v3731_v48 }
  0x28   : > { %3672 = vmatprep.subr.bf16.mxu1 %v3886_v23  ;;  %3210 = vmatprep.subr.bf16.mxu0 %v3886_v23 }
  0x2a   : > { %297 = vadd.xlane.f32.xlu1 %v270_v20  ;;  %295 = vadd.xlane.f32.xlu0 %v269_v21 }
  0x2b   : > { %3680 = vmatpush3.bf16.msra.mxu1 %v3732_v51  ;;  %3211 = vmatpush3.bf16.msra.mxu0 %v3732_v51 }
  0x2c   : > { %3673 = vmatprep.subr.bf16.mxu1 %v3886_v23  ;;  %3212 = vmatprep.subr.bf16.mxu0 %v3886_v23 }
  0x2e   : > { %321 = vadd.xlane.f32.xlu1 %v282_v26  ;;  %319 = vadd.xlane.f32.xlu0 %v281_v27 }
  0x2f   : > { %3681 = vmatpush3.bf16.msra.mxu1 %v3733_v52  ;;  %3213 = vmatpush3.bf16.msra.mxu0 %v3733_v52 }
  0x30   : > { %3250 = vmatprep.subr.bf16.mxu1 %v3886_v23  ;;  %3302 = vmatprep.subr.bf16.mxu0 %v3886_v23 }
  0x32   : > { %301 = vadd.xlane.f32.xlu1 %v272_v31  ;;  %299 = vadd.xlane.f32.xlu0 %v271_v32 }
  0x36   : > { %325 = vadd.xlane.f32.xlu1 %v284_v36  ;;  %323 = vadd.xlane.f32.xlu0 %v283_v37 }
  0x3a   : > { %305 = vadd.xlane.f32.xlu1 %v274_v41  ;;  %303 = vadd.xlane.f32.xlu0 %v273_v42 }
  0x3e   : > { %329 = vadd.xlane.f32.xlu1 %v286_v46  ;;  %327 = vadd.xlane.f32.xlu0 %v285_v47 }
  0x42   : > { %333 = vadd.xlane.f32.xlu1 %v288_v49  ;;  %331 = vadd.xlane.f32.xlu0 %v287_v50 }
  0x46   : > { %337 = vadd.xlane.f32.xlu1 %v290_v55  ;;  %335 = vadd.xlane.f32.xlu0 %v289_v56 }
  0xa7   : > { %v312_v57 = vpop.xlane.xlu1 %311  ;;  %v308_v58 = vpop.xlane.xlu0 %307 }
  0xa8   : > { %v349_v59 = vmul.f32 0.03125, %v312_v57  ;;  %v347_v60 = vmul.f32 0.03125, %v308_v58 }
  0xaa   : > { %v373_v61 = vadd.f32 1e-08, %v349_v59  ;;  %v371_v62 = vadd.f32 1e-08, %v347_v60 }
  0xab   : > { %v314_v63 = vpop.xlane.xlu1 %313  ;;  %v310_v3 = vpop.xlane.xlu0 %309 }
  0xac   : > { %v350_v4 = vmul.f32 0.03125, %v314_v63  ;;  %v348_v6 = vmul.f32 0.03125, %v310_v3  ;;  %3798 = vrsqrt.f32 %v373_v61 }
  0xad   : > { %3800 = vrsqrt.f32 %v371_v62 }
  0xae   : > { %v374_v7 = vadd.f32 1e-08, %v350_v4  ;;  %v372_v11 = vadd.f32 1e-08, %v348_v6 }
  0xaf   : > { %v294_v12 = vpop.xlane.xlu1 %293  ;;  %v292_v16 = vpop.xlane.xlu0 %291 }
  0xb0   : > { %3802 = vrsqrt.f32 %v374_v7  ;;  %v340_v17 = vmul.f32 0.03125, %v294_v12  ;;  %v339_v20 = vmul.f32 0.03125, %v292_v16 }
  0xb1   : > { %3804 = vrsqrt.f32 %v372_v11 }
  0xb2   : > { %v364_v21 = vadd.f32 1e-08, %v340_v17  ;;  %v363_v22 = vadd.f32 1e-08, %v339_v20 }
  0xb3   : > { %v318_v26 = vpop.xlane.xlu1 %317  ;;  %v316_v27 = vpop.xlane.xlu0 %315 }
  0xb4   : > { %3806 = vrsqrt.f32 %v364_v21  ;;  %v352_v28 = vmul.f32 0.03125, %v318_v26  ;;  %v351_v31 = vmul.f32 0.03125, %v316_v27 }
  0xb5   : > { %3808 = vrsqrt.f32 %v363_v22 }
  0xb6   : > { %v376_v32 = vadd.f32 1e-08, %v352_v28  ;;  %v375_v33 = vadd.f32 1e-08, %v351_v31  ;;  %v3799_v36 = vpop.eup %3798 }
  0xb7   : > { %v298_v37 = vpop.xlane.xlu1 %297  ;;  %v296_v38 = vpop.xlane.xlu0 %295  ;;  %v421_v50 = vmul.f32 %v3799_v36, %v3950_v0 }
  0xb8   : > { %v3801_v41 = vpop.eup %3800  ;;  %3810 = vrsqrt.f32 %v376_v32  ;;  %v342_v42 = vmul.f32 0.03125, %v298_v37  ;;  %v341_v43 = vmul.f32 0.03125, %v296_v38 }
  0xb9   : > { %3812 = vrsqrt.f32 %v375_v33  ;;  %v419_v51 = vmul.f32 %v3801_v41, %v3953_v1 }
  0xba   : > { %v3803_v46 = vpop.eup %3802  ;;  %v366_v47 = vadd.f32 1e-08, %v342_v42  ;;  %v365_v48 = vadd.f32 1e-08, %v341_v43 }
  0xbb   : > { %v3805_v49 = vpop.eup %3804  ;;  %v422_v52 = vmul.f32 %v3803_v46, %v3956_v2  ;;  %v322_v55 = vpop.xlane.xlu1 %321 }
  0xbc   : > { %v320_v56 = vpop.xlane.xlu0 %319  ;;  %v420_v57 = vmul.f32 %v3805_v49, %v3963_v5  ;;  %3814 = vrsqrt.f32 %v366_v47  ;;  %v354_v58 = vmul.f32 0.03125, %v322_v55 }
  0xbd   : > { %v353_v59 = vmul.f32 0.03125, %v320_v56  ;;  %v4119_v60 = vpack.c.bf16 %v422_v52, %v421_v50  ;;  %3816 = vrsqrt.f32 %v365_v48 }
  0xbe   : > { %v3807_v61 = vpop.eup %3806  ;;  %v4121_v62 = vpack.c.bf16 %v420_v57, %v419_v51  ;;  %v378_v63 = vadd.f32 1e-08, %v354_v58 }
  0xbf   : > { %v377_v3 = vadd.f32 1e-08, %v353_v59  ;;  %v3809_v0 = vpop.eup %3808  ;;  %452 = vst [vmem:[#allocation2 + $0x28] sm:$0xff] %v4119_v60  ;;  %v412_v1 = vmul.f32 %v3807_v61, %v3970_v8  ;;  %v302_v2 = vpop.xlane.xlu1 %301  ;;  %v543_v12 = vshll.u32 %v4119_v60, 16 }
  0xc0   : > { %v300_v4 = vpop.xlane.xlu0 %299  ;;  %451 = vst [vmem:[#allocation2 + $0x20] sm:$0xff] %v4121_v62  ;;  %v411_v5 = vmul.f32 %v3809_v0, %v3973_v9  ;;  %3818 = vrsqrt.f32 %v378_v63  ;;  %v344_v6 = vmul.f32 0.03125, %v302_v2  ;;  %v535_v11 = vshll.u32 %v4121_v62, 16 }
  0xc1   : > { %v343_v7 = vmul.f32 0.03125, %v300_v4  ;;  %3820 = vrsqrt.f32 %v377_v3  ;;  %v539_v28 = vshrl.u32 %v4121_v62, 16  ;;  %v545_v37 = vrot.slane %v543_v12, 1 }
  0xc2   : > { %v3811_v16 = vpop.eup %3810  ;;  %v4129_v17 = vpack.c.bf16 %v412_v1, %v411_v5  ;;  %v368_v20 = vadd.f32 1e-08, %v344_v6  ;;  %v4132_v9 = vrot.slane %v535_v11, 1  ;;  %v547_v1 = vshrl.u32 %v4119_v60, 16 }
  0xc3   : > { %v367_v21 = vadd.f32 1e-08, %v343_v7  ;;  %v3813_v8 = vpop.eup %3812  ;;  %v424_v22 = vmul.f32 %v3811_v16, %v3976_v10  ;;  %v326_v26 = vpop.xlane.xlu1 %325  ;;  %v3734_v10 = vld [vmem:[%s5235_s1] sm:$0xff]   ;;  %v3736_v16 = vld [vmem:[%s5235_s1 + $0x10] sm:$0xff]  }
  0xc4   : > { %v324_v27 = vpop.xlane.xlu0 %323  ;;  %447 = vst [vmem:[#allocation2] sm:$0xff] %v4129_v17  ;;  %v423_v31 = vmul.f32 %v3813_v8, %v3983_v13  ;;  %3822 = vrsqrt.f32 %v368_v20  ;;  %v356_v32 = vmul.f32 0.03125, %v326_v26  ;;  %v541_v36 = vor.u32 %v539_v28, %v4132_v9 }
  0xc5   : > { %v355_v33 = vmul.f32 0.03125, %v324_v27  ;;  %3824 = vrsqrt.f32 %v367_v21  ;;  %v506_v50 = vshll.u32 %v4129_v17, 16  ;;  %v549_v11 = vor.u32 %v547_v1, %v545_v37 }
  0xc6   : > { %v3815_v38 = vpop.eup %3814  ;;  %v4141_v41 = vpack.c.bf16 %v424_v22, %v423_v31  ;;  %v380_v42 = vadd.f32 1e-08, %v356_v32  ;;  %v546_v49 = vsel %vm502_vm1, %v541_v36, %v545_v37  ;;  %v504_v12 = vshrl.u32 %v4129_v17, 16  ;;  %v3737_v36 = vld [vmem:[%s5235_s1 + $0x80] sm:$0xff]  }
  0xc7   : > { %v379_v43 = vadd.f32 1e-08, %v355_v33  ;;  %v3817_v46 = vpop.eup %3816  ;;  %v414_v47 = vmul.f32 %v3815_v38, %v3986_v14  ;;  %v306_v13 = vpop.xlane.xlu1 %305  ;;  %3231 = vmatmul.mubr.bf16.vlgmr.msra.gmra.mrb[0].mxu1 %v546_v49  ;;  %v3735_v14 = vld [vmem:[%s5235_s1 + $0x8] sm:$0xff]   ;;  %v508_v4 = vrot.slane %v506_v50, 1 }
  0xc8   : > { %v304_v48 = vpop.xlane.xlu0 %303  ;;  %453 = vst [vmem:[#allocation2 + $0x30] sm:$0xff] %v4141_v41  ;;  %v413_v51 = vmul.f32 %v3817_v46, %v3989_v15  ;;  %3826 = vrsqrt.f32 %v380_v42  ;;  %v346_v52 = vmul.f32 0.03125, %v306_v13  ;;  %3251 = vmatpush3.bf16.msra.mxu1 %v3734_v10  ;;  %3234 = vmatprep.mubr.msk.bf16.mxu1 %vm3887_vm0, %v3886_v23  ;;  %v551_v56 = vshll.u32 %v4141_v41, 16  ;;  %v3739_v42 = vld [vmem:[%s5235_s1 + $0x18] sm:$0xff]   ;;  %v3738_v50 = vld [vmem:[%s5235_s1 + $0x88] sm:$0xff]  }
  0xc9   : > { %v345_v55 = vmul.f32 0.03125, %v304_v48  ;;  %3828 = vrsqrt.f32 %v379_v43  ;;  %3252 = vmatprep.subr.bf16.mxu1 %v3886_v23  ;;  %v509_v32 = vor.u32 %v508_v4, %v504_v12  ;;  %v3743_v12 = vld [vmem:[%s5235_s1 + $0x28] sm:$0xff]  }
  0xca   : > { %v3819_v57 = vpop.eup %3818  ;;  %v4154_v58 = vpack.c.bf16 %v414_v47, %v413_v51  ;;  %v370_v59 = vadd.f32 1e-08, %v346_v52  ;;  %v553_v2 = vrot.slane %v551_v56, 1  ;;  %v555_v51 = vshrl.u32 %v4141_v41, 16 }
  0xcb   : > { %v369_v15 = vadd.f32 1e-08, %v345_v55  ;;  %v3821_v61 = vpop.eup %3820  ;;  %v426_v63 = vmul.f32 %v3819_v57, %v3996_v18  ;;  %v330_v3 = vpop.xlane.xlu1 %329 }
  0xcc   : > { %v328_v0 = vpop.xlane.xlu0 %327  ;;  %448 = vst [vmem:[#allocation2 + $0x8] sm:$0xff] %v4154_v58  ;;  %v425_v5 = vmul.f32 %v3821_v61, %v3999_v19  ;;  %3830 = vrsqrt.f32 %v370_v59  ;;  %v358_v6 = vmul.f32 0.03125, %v330_v3  ;;  %3253 = vmatpush3.bf16.msra.mxu1 %v3735_v14  ;;  %v511_v18 = vshll.u32 %v4154_v58, 16  ;;  %v3741_v59 = vld [vmem:[%s5235_s1 + $0x20] sm:$0xff]  }
  0xcd   : > { %v357_v7 = vmul.f32 0.03125, %v328_v0  ;;  %3832 = vrsqrt.f32 %v369_v15  ;;  %3254 = vmatprep.subr.bf16.mxu1 %v3886_v23  ;;  %v554_v31 = vsel %vm502_vm1, %v549_v11, %v553_v2  ;;  %v557_v57 = vor.u32 %v555_v51, %v553_v2 }
  0xce   : > { %v3823_v20 = vpop.eup %3822  ;;  %v4166_v21 = vpack.c.bf16 %v426_v63, %v425_v5  ;;  %v382_v8 = vadd.f32 1e-08, %v358_v6  ;;  %v513_v33 = vrot.slane %v511_v18, 1  ;;  %v3740_v5 = vld [vmem:[%s5235_s1 + $0x90] sm:$0xff]  }
  0xcf   : > { %v381_v22 = vadd.f32 1e-08, %v357_v7  ;;  %v3825_v19 = vpop.eup %3824  ;;  %v416_v26 = vmul.f32 %v3823_v20, %v4011_v24  ;;  %v334_v27 = vpop.xlane.xlu1 %333  ;;  %3235 = vmatmul.mubr.bf16.gmra.mrb[4].mxu1 %v554_v31 }
  0xd0   : > { %v332_v28 = vpop.xlane.xlu0 %331  ;;  %454 = vst [vmem:[#allocation2 + $0x38] sm:$0xff] %v4166_v21  ;;  %v415_v37 = vmul.f32 %v3825_v19, %v4014_v25  ;;  %3834 = vrsqrt.f32 %v382_v8  ;;  %v360_v10 = vmul.f32 0.03125, %v334_v27  ;;  %v514_v24 = vsel %vm502_vm1, %v509_v32, %v513_v33  ;;  %3255 = vmatpush3.bf16.msra.mxu1 %v3736_v16  ;;  %3238 = vmatprep.mubr.msk.bf16.mxu1 %vm3887_vm0, %v3886_v23  ;;  %v3742_v19 = vld [vmem:[%s5235_s1 + $0x98] sm:$0xff]   ;;  %v4246_v32 = vld [vmem:[#allocation2 + $0x20] sm:$0xff] }
  0xd1   : > { %v359_v38 = vmul.f32 0.03125, %v332_v28  ;;  %3836 = vrsqrt.f32 %v381_v22  ;;  %v559_v43 = vshll.u32 %v4166_v21, 16  ;;  %3215 = vmatmul.mubr.bf16.vlgmr.msra.gmra.mrb[0].mxu0 %v514_v24  ;;  %3256 = vmatprep.subr.bf16.mxu1 %v3886_v23  ;;  %v563_v20 = vshrl.u32 %v4166_v21, 16 }
  0xd2   : > { %v3827_v46 = vpop.eup %3826  ;;  %v4183_v47 = vpack.c.bf16 %v416_v26, %v415_v37  ;;  %v384_v25 = vadd.f32 1e-08, %v360_v10  ;;  %3303 = vmatpush3.bf16.msra.mxu0 %v3737_v36  ;;  %3218 = vmatprep.mubr.msk.bf16.mxu0 %vm3887_vm0, %v3886_v23  ;;  %v3745_v36 = vld [vmem:[%s5235_s1 + $0x30] sm:$0xff]  }
  0xd3   : > { %v383_v13 = vadd.f32 1e-08, %v359_v38  ;;  %v3829_v48 = vpop.eup %3828  ;;  %v428_v49 = vmul.f32 %v3827_v46, %v4026_v29  ;;  %v561_v52 = vrot.slane %v559_v43, 1  ;;  %v4193_v55 = vld [vmem:[#allocation2 + $0x8] sm:$0xfe]  ;;  %3304 = vmatprep.subr.bf16.mxu0 %v3886_v23  ;;  %v515_v29 = vshrl.u32 %v4154_v58, 16 }
  0xd4   : > { %449 = vst [vmem:[#allocation2 + $0x10] sm:$0xff] %v4183_v47  ;;  %v427_v14 = vmul.f32 %v3829_v48, %v4029_v30  ;;  %3838 = vrsqrt.f32 %v384_v25  ;;  %v519_v56 = vshll.u32 %v4183_v47, 16  ;;  %3257 = vmatpush3.bf16.msra.mxu1 %v3739_v42  ;;  %v4204_v15 = vrot.slane %v4183_v47, 1 }
  0xd5   : > { %3840 = vrsqrt.f32 %v383_v13  ;;  %v517_v30 = vor.u32 %v515_v29, %v513_v33  ;;  %3258 = vmatprep.subr.bf16.mxu1 %v3886_v23  ;;  %v1159_v0 = vrot.slane %v4193_v55, 1  ;;  %v562_v2 = vsel %vm502_vm1, %v557_v57, %v561_v52  ;;  %v336_v29 = vpop.xlane.xlu0 %335 }
  0xd6   : > { %v3831_v61 = vpop.eup %3830  ;;  %v4206_v63 = vpack.c.bf16 %v428_v49, %v427_v14  ;;  %v521_v3 = vrot.slane %v519_v56, 1  ;;  %3305 = vmatpush3.bf16.msra.mxu0 %v3738_v50  ;;  %v523_v6 = vshrl.u32 %v4183_v47, 16  ;;  %v1391_v28 = vrot.slane %v519_v56, 2  ;;  %v3744_v49 = vld [vmem:[%s5235_s1 + $0xa0] sm:$0xff]   ;;  %v338_v14 = vpop.xlane.xlu1 %337  ;;  %v3748_v56 = vld [vmem:[%s5235_s1 + $0x38] sm:$0xff]  }
  0xd7   : > { %v3833_v1 = vpop.eup %3832  ;;  %v418_v4 = vmul.f32 %v3831_v61, %v4041_v34  ;;  %3239 = vmatmul.mubr.bf16.gmra.mrb[8].mxu1 %v562_v2  ;;  %3306 = vmatprep.subr.bf16.mxu0 %v3886_v23  ;;  %v4228_v18 = vsel %vm922_vm2, %v1159_v0, %v4204_v15  ;;  %v565_v33 = vor.u32 %v563_v20, %v561_v52  ;;  %v5240_v50 = vrot.slane %v4246_v32, 1  ;;  %v3746_v61 = vld [vmem:[%s5235_s1 + $0xa8] sm:$0xff]  }
  0xd8   : > { %455 = vst [vmem:[#allocation2 + $0x40] sm:$0xff] %v4206_v63  ;;  %v417_v7 = vmul.f32 %v3833_v1, %v4044_v35  ;;  %v522_v11 = vsel %vm502_vm1, %v517_v30, %v521_v3  ;;  %v567_v34 = vshll.u32 %v4206_v63, 16  ;;  %3259 = vmatpush3.bf16.msra.mxu1 %v3741_v59  ;;  %3242 = vmatprep.mubr.msk.bf16.mxu1 %vm3887_vm0, %v3886_v23  ;;  %v1388_v27 = vrot.slane %v523_v6, 1 }
  0xd9   : > { %3219 = vmatmul.mubr.bf16.gmra.mrb[4].mxu0 %v522_v11  ;;  %3260 = vmatprep.subr.bf16.mxu1 %v3886_v23  ;;  %v525_v42 = vor.u32 %v523_v6, %v521_v3  ;;  %v362_v30 = vmul.f32 0.03125, %v338_v14  ;;  %v361_v3 = vmul.f32 0.03125, %v336_v29  ;;  %v571_v6 = vshrl.u32 %v4206_v63, 16 }
  0xda   : > { %v3835_v35 = vpop.eup %3834  ;;  %v4230_v16 = vpack.c.bf16 %v418_v4, %v417_v7  ;;  %3307 = vmatpush3.bf16.msra.mxu0 %v3740_v5  ;;  %v4238_v26 = vrot.slane %v567_v34, 1  ;;  %3222 = vmatprep.mubr.msk.bf16.mxu0 %vm3887_vm0, %v3886_v23  ;;  %v4255_v38 = vor.u32 %v1391_v28, %v1388_v27  ;;  %v3747_v7 = vld [vmem:[%s5235_s1 + $0xb0] sm:$0xff]  }
  0xdb   : > { %v3837_v8 = vpop.eup %3836  ;;  %v430_v22 = vmul.f32 %v3835_v35, %v4056_v39  ;;  %3308 = vmatprep.subr.bf16.mxu0 %v3886_v23  ;;  %v386_v4 = vadd.f32 1e-08, %v362_v30  ;;  %v385_v2 = vadd.f32 1e-08, %v361_v3 }
  0xdc   : > { %450 = vst [vmem:[#allocation2 + $0x18] sm:$0xff] %v4230_v16  ;;  %v429_v31 = vmul.f32 %v3837_v8, %v4059_v40  ;;  %v527_v39 = vshll.u32 %v4230_v16, 16  ;;  %3261 = vmatpush3.bf16.msra.mxu1 %v3743_v12  ;;  %v531_v37 = vshrl.u32 %v4230_v16, 16  ;;  %v4253_v10 = vrot.slane %v4230_v16, 1 }
  0xdd   : > { %3262 = vmatprep.subr.bf16.mxu1 %v3886_v23  ;;  %v570_v48 = vsel %vm502_vm1, %v565_v33, %v4238_v26  ;;  %3842 = vrsqrt.f32 %v386_v4  ;;  %v5252_v12 = vrot.slane %v4206_v63, 1  ;;  %v573_v8 = vor.u32 %v571_v6, %v4238_v26 }
  0xde   : > { %v3839_v40 = vpop.eup %3838  ;;  %v4257_v24 = vpack.c.bf16 %v430_v22, %v429_v31  ;;  %v529_v43 = vrot.slane %v527_v39, 1  ;;  %v1400_v46 = vrot.slane %v527_v39, 2  ;;  %3309 = vmatpush3.bf16.msra.mxu0 %v3742_v19  ;;  %3844 = vrsqrt.f32 %v385_v2  ;;  %v894_v19 = vld [vmem:[#allocation2] sm:$0xfe]  ;;  %v3749_v31 = vld [vmem:[%s5235_s1 + $0xb8] sm:$0xff]  }
  0xdf   : > { %v3841_v25 = vpop.eup %3840  ;;  %v432_v13 = vmul.f32 %v3839_v40, %v4071_v44  ;;  %3243 = vmatmul.mubr.bf16.gmra.mrb[12].mxu1 %v570_v48  ;;  %3310 = vmatprep.subr.bf16.mxu0 %v3886_v23  ;;  %v1397_v44 = vrot.slane %v531_v37, 1  ;;  %v4301_v11 = vld [vmem:[#allocation2 + $0x40] sm:$0xff]  ;;  %v924_v40 = vrot.slane %v4154_v58, 1  ;;  %v4352_v3 = vsel %vm922_vm2, %v4204_v15, %v4253_v10 }
  0xe0   : > { %456 = vst [vmem:[#allocation2 + $0x48] sm:$0xff] %v4257_v24  ;;  %v431_v51 = vmul.f32 %v3841_v25, %v4074_v45  ;;  %v530_v52 = vsel %vm502_vm1, %v525_v42, %v529_v43  ;;  %3263 = vmatpush3.bf16.msra.mxu1 %v3745_v36  ;;  %3246 = vmatprep.mubr.msk.bf16.mxu1 %vm3887_vm0, %v3886_v23  ;;  %v5239_v28 = vrot.slane %v4301_v11, 1  ;;  %v1449_v33 = vshrl.u32 %v4257_v24, 16 }
  0xe1   : > { %v4280_v45 = vsel %vm922_vm2, %v4253_v10, %v5240_v50  ;;  %3223 = vmatmul.mubr.bf16.gmra.mrb[8].mxu0 %v530_v52  ;;  %3264 = vmatprep.subr.bf16.mxu1 %v3886_v23  ;;  %v4283_v59 = vor.u32 %v1400_v46, %v1397_v44  ;;  %v533_v1 = vor.u32 %v531_v37, %v529_v43  ;;  %v923_v37 = vrot.slane %v894_v19, 1  ;;  %v4341_v44 = vld [vmem:[#allocation2 + $0x28] sm:$0xff] }
  0xe2   : > { %v445_v57 = vpack.c.bf16 %v432_v13, %v431_v51  ;;  %3311 = vmatpush3.bf16.msra.mxu0 %v3744_v49  ;;  %3226 = vmatprep.mubr.msk.bf16.mxu0 %vm3887_vm0, %v3886_v23  ;;  %v1452_v43 = vshll.u32 %v4257_v24, 16  ;;  %v1451_v46 = vrot.slane %v1449_v33, 1  ;;  %v3751_v49 = vld [vmem:[%s5235_s1 + $0x100] sm:$0xff]   ;;  %v5241_v52 = vshrl.u32 %v4246_v32, 16 }
  0xe3   : > { %3312 = vmatprep.subr.bf16.mxu0 %v3886_v23  ;;  %v4294_v0 = vsel %vm1376_vm3, %v4255_v38, %v4283_v59  ;;  %v538_v20 = vsel %vm502_vm1, %v533_v1, %v4132_v9  ;;  %v1174_v9 = vrot.slane %v4257_v24, 1  ;;  %v927_v30 = vsel %vm922_vm2, %v924_v40, %v4204_v15  ;;  %v4354_v1 = vld [vmem:[#allocation2 + $0x30] sm:$0xff] }
  0xe4   : > { %457 = vst [vmem:[#allocation2 + $0x50] sm:$0xff] %v445_v57  ;;  %3265 = vmatpush3.bf16.msra.mxu1 %v3748_v56  ;;  %v1454_v51 = vrot.slane %v1452_v43, 2  ;;  %v5238_v4 = vrot.slane %v4183_v47, 2  ;;  %v1670_v15 = vrot.slane %v4230_v16, 2  ;;  %v4375_v19 = vrot.slane %v4246_v32, 2 }
  0xe5   : > { %3354 = vmatprep.subr.bf16.mxu1 %v3886_v23  ;;  %v4329_v42 = vsel %vm922_vm2, %v5239_v28, %v1174_v9  ;;  %v2414_v28 = vrot.slane %v4246_v32, 3 }
  0xe6   : > { %3313 = vmatpush3.bf16.msra.mxu0 %v3746_v61  ;;  %v925_v61 = vsel %vm922_vm2, %v923_v37, %v924_v40  ;;  %v4391_v37 = vld [vmem:[#allocation2 + $0x10] sm:$0xfc]  ;;  %v4395_v40 = vsel %vm1666_vm4, %v1670_v15, %v4375_v19 }
  0xe7   : > { %v484_v5 = vld [vmem:[#allocation2 + $0x48] sm:$0x1]  ;;  %3314 = vmatprep.subr.bf16.mxu0 %v3886_v23  ;;  %v3843_v57 = vpop.eup %3842 }
  0xe8   : > { %v575_v34 = vshll.u32 %v484_v5, 16  ;;  %v940_v35 = vrot.slane %v484_v5, 1  ;;  %v3845_v2 = vpop.eup %3844  ;;  %v3750_v5 = vld [vmem:[%s5235_s1 + $0xc0] sm:$0xff]   ;;  %v434_v6 = vmul.f32 %v3843_v57, %v4106_v53 }
  0xe9   : > { %3227 = vmatmul.mubr.bf16.gmra.mrb[12].mxu0 %v538_v20  ;;  %v3753_v20 = vld [vmem:[%s5235_s1 + $0x108] sm:$0xff]   ;;  %v433_v53 = vmul.f32 %v3845_v2, %v4109_v54  ;;  %v5250_v54 = vshll.u32 %v4341_v44, 16 }
  0xea   : > { %v577_v22 = vrot.slane %v575_v34, 1  ;;  %v4311_v27 = vsel %vm922_vm2, %v5252_v12, %v940_v35  ;;  %3315 = vmatpush3.bf16.msra.mxu0 %v3747_v7  ;;  %3318 = vmatprep.mubr.msk.bf16.mxu0 %vm3887_vm0, %v3886_v23  ;;  %v4361_v7 = vld [vmem:[#allocation2 + $0x38] sm:$0xff]  ;;  %v4363_v34 = vor.u32 %v1454_v51, %v1451_v46  ;;  %v3752_v46 = vld [vmem:[%s5235_s1 + $0xc8] sm:$0xff]   ;;  %v5245_v51 = vshll.u32 %v4354_v1, 16 }
  0xeb   : > { %v1131_v26 = vld [vmem:[#allocation2 + $0x50] sm:$0x1]  ;;  %3316 = vmatprep.subr.bf16.mxu0 %v3886_v23  ;;  %v446_v33 = vpack.c.bf16 %v434_v6, %v433_v53  ;;  %v1912_v43 = vrot.slane %v4361_v7, 2  ;;  %v5246_v2 = vshrl.u32 %v4361_v7, 16  ;;  %v2122_v6 = vshrl.u32 %v4391_v37, 16 }
  0xec   : > { %v578_v39 = vsel %vm502_vm1, %v573_v8, %v577_v22  ;;  %v4323_v36 = vld [vmem:[#allocation2 + $0x50] sm:$0x3]  ;;  %v1176_v25 = vrot.slane %v1131_v26, 1  ;;  %v5242_v8 = vshll.u32 %v4246_v32, 16  ;;  %v5243_v22 = vshrl.u32 %v4341_v44, 16 }
  0xed   : > { %3247 = vmatmul.mubr.bf16.gmra.mrb[16].mxu1 %v578_v39  ;;  %v1458_v13 = vshrl.u32 %v4323_v36, 16  ;;  %v1461_v48 = vshll.u32 %v4323_v36, 16  ;;  %v1908_v26 = vrot.slane %v4341_v44, 2  ;;  %v1910_v39 = vrot.slane %v4354_v1, 2  ;;  %458 = vst [vmem:[#allocation2 + $0x58] sm:$0xff] %v446_v33  ;;  %v3754_v53 = vld [vmem:[%s5235_s1 + $0xd0] sm:$0xff]  }
  0xee   : > { %3266 = vmatprep.mubr.msk.bf16.mxu1 %vm3887_vm0, %v3886_v23  ;;  %3317 = vmatpush3.bf16.msra.mxu0 %v3749_v31  ;;  %v4344_v14 = vsel %vm922_vm2, %v1174_v9, %v1176_v25  ;;  %v4385_v9 = vsel %vm1666_vm4, %v5238_v4, %v1670_v15  ;;  %v4404_v25 = vld [vmem:[#allocation2 + $0x18] sm:$0xff]  ;;  %v1684_v57 = vrot.slane %v4323_v36, 2 }
  0xef   : > { %3406 = vmatprep.subr.bf16.mxu0 %v3886_v23  ;;  %v1460_v29 = vrot.slane %v1458_v13, 1  ;;  %v1463_v56 = vrot.slane %v1461_v48, 2  ;;  %v4408_v13 = vsel %vm1666_vm4, %v4375_v19, %v1908_v26  ;;  %v4411_v48 = vsel %vm1666_vm4, %v1908_v26, %v1910_v39 }
  0xf0   : > { %v5249_v26 = vshrl.u32 %v4301_v11, 16 }
  0xf1   : > { %3319 = vmatmul.mubr.bf16.vlgmr.msra.gmra.mrb[16].mxu0 %v925_v61  ;;  %v1464_v35 = vor.u32 %v1463_v56, %v1460_v29  ;;  %v4419_v29 = vsel %vm1666_vm4, %v1910_v39, %v1912_v43  ;;  %v1682_v56 = vrot.slane %v4257_v24, 2  ;;  %v3755_v61 = vld [vmem:[%s5235_s1 + $0x110] sm:$0xff]   ;;  %v5248_v24 = vshll.u32 %v4361_v7, 16 }
  0xf2   : > { %3407 = vmatpush3.bf16.msra.mxu0 %v3751_v49  ;;  %3322 = vmatprep.mubr.msk.bf16.mxu0 %vm3887_vm0, %v3886_v23  ;;  %v4414_v49 = vrot.slane %v4301_v11, 2  ;;  %v2124_v39 = vrot.slane %v2122_v6, 2  ;;  %v3757_v6 = vld [vmem:[%s5235_s1 + $0x118] sm:$0xff]  }
  0xf3   : > { %3408 = vmatprep.subr.bf16.mxu0 %v3886_v23  ;;  %v4380_v31 = vsel %vm1376_vm3, %v4363_v34, %v1464_v35  ;;  %v2125_v35 = vshll.u32 %v4391_v37, 16  ;;  %v4440_v15 = vsel %vm1666_vm4, %v1682_v56, %v1684_v57  ;;  %v5244_v57 = vrot.slane %v4404_v25, 3 }
  0xf4   : > { %v4437_v36 = vsel %vm1666_vm4, %v4414_v49, %v1682_v56 }
  0xf5   : > { %3267 = vmatmul.mubr.bf16.vlgmr.msra.gmra.mrb[20].mxu1 %v4129_v17  ;;  %v5247_v17 = vshrl.u32 %v4354_v1, 16  ;;  %v2127_v33 = vrot.slane %v2125_v35, 3  ;;  %v5251_v35 = vshll.u32 %v4301_v11, 16 }
  0xf6   : > { %3355 = vmatpush3.bf16.msra.mxu1 %v3750_v5  ;;  %3270 = vmatprep.mubr.msk.bf16.mxu1 %vm3887_vm0, %v3886_v23  ;;  %v4430_v5 = vsel %vm1666_vm4, %v1912_v43, %v4414_v49  ;;  %v2133_v43 = vshll.u32 %v4404_v25, 16 }
  0xf7   : > { %3356 = vmatprep.subr.bf16.mxu1 %v3886_v23  ;;  %3409 = vmatpush3.bf16.msra.mxu0 %v3753_v20  ;;  %v2130_v20 = vshrl.u32 %v4404_v25, 16  ;;  %v2128_v50 = vor.u32 %v2127_v33, %v2124_v39  ;;  %v2159_v39 = vrot.slane %v5247_v17, 2  ;;  %v2162_v33 = vrot.slane %v5245_v51, 3 }
  0xf8   : > { %3410 = vmatprep.subr.bf16.mxu0 %v3886_v23  ;;  %v2135_v4 = vrot.slane %v2133_v43, 3  ;;  %v3756_v43 = vld [vmem:[%s5235_s1 + $0xd8] sm:$0xff]  }
  0xf9   : > { %3323 = vmatmul.mubr.bf16.gmra.mrb[20].mxu0 %v927_v30  ;;  %v2132_v56 = vrot.slane %v2130_v20, 2  ;;  %v2141_v30 = vrot.slane %v5241_v52, 2  ;;  %v2150_v20 = vrot.slane %v5243_v22, 2 }
  0xfa   : > { %3357 = vmatpush3.bf16.msra.mxu1 %v3752_v46  ;;  %3326 = vmatprep.mubr.msk.bf16.mxu0 %vm3887_vm0, %v3886_v23  ;;  %v2144_v46 = vrot.slane %v5242_v8, 3  ;;  %v2416_v8 = vrot.slane %v4341_v44, 3 }
  0xfb   : > { %3358 = vmatprep.subr.bf16.mxu1 %v3886_v23  ;;  %3411 = vmatpush3.bf16.msra.mxu0 %v3755_v61  ;;  %v2153_v61 = vrot.slane %v5250_v54, 3  ;;  %v2136_v22 = vor.u32 %v2135_v4, %v2132_v56  ;;  %v2168_v4 = vrot.slane %v5246_v2, 2  ;;  %v3759_v56 = vld [vmem:[%s5235_s1 + $0x120] sm:$0xff]   ;;  %v4503_v2 = vld [vmem:[#allocation2 + $0x50] sm:$0xff] }
  0xfc   : > { %3412 = vmatprep.subr.bf16.mxu0 %v3886_v23  ;;  %v2145_v52 = vor.u32 %v2144_v46, %v2141_v30  ;;  %v2418_v46 = vrot.slane %v4354_v1, 3 }
  0xfd   : > { %3271 = vmatmul.mubr.bf16.gmra.mrb[24].mxu1 %v4154_v58  ;;  %v4476_v58 = vsel %vm2410_vm5, %v5244_v57, %v2414_v28  ;;  %v2154_v30 = vor.u32 %v2153_v61, %v2150_v20  ;;  %v4492_v57 = vld [vmem:[#allocation2 + $0x48] sm:$0xff]  ;;  %v4495_v51 = vsel %vm2120_vm6, %v2128_v50, %v2136_v22  ;;  %v2171_v61 = vrot.slane %v5248_v24, 3 }
  0xfe   : > { %3274 = vmatprep.mubr.msk.bf16.mxu1 %vm3887_vm0, %v3886_v23  ;;  %3359 = vmatpush3.bf16.msra.mxu1 %v3754_v53  ;;  %v4484_v53 = vsel %vm2410_vm5, %v2414_v28, %v2416_v8  ;;  %v4498_v20 = vsel %vm2120_vm6, %v2136_v22, %v2145_v52  ;;  %v2163_v28 = vor.u32 %v2162_v33, %v2159_v39  ;;  %v2420_v50 = vrot.slane %v4361_v7, 3  ;;  %v3758_v39 = vld [vmem:[%s5235_s1 + $0xe0] sm:$0xff]  }
  0xff   : > { %3360 = vmatprep.subr.bf16.mxu1 %v3886_v23  ;;  %3413 = vmatpush3.bf16.msra.mxu0 %v3757_v6  ;;  %v4506_v6 = vsel %vm2120_vm6, %v2145_v52, %v2154_v30  ;;  %v4509_v17 = vsel %vm2410_vm5, %v2416_v8, %v2418_v46  ;;  %v2177_v22 = vrot.slane %v5249_v26, 2  ;;  %v2172_v52 = vor.u32 %v2171_v61, %v2168_v4  ;;  %v3761_v4 = vld [vmem:[%s5235_s1 + $0x128] sm:$0xff]  }
 0x100   : > { %3414 = vmatprep.subr.bf16.mxu0 %v3886_v23  ;;  %5253 = vst [vmem:[#allocation3_spill] sm:$0xff] %v4509_v17  ;;  %v4519_v33 = vsel %vm2120_vm6, %v2154_v30, %v2163_v28  ;;  %v2180_v8 = vrot.slane %v5251_v35, 3  ;;  %v2422_v24 = vrot.slane %v4301_v11, 3  ;;  %v2184_v26 = vshrl.u32 %v4492_v57, 16 }
 0x101   : > { %3327 = vmatmul.mubr.bf16.gmra.mrb[24].mxu0 %v4352_v3  ;;  %5254 = vst [vmem:[#allocation4_spill] sm:$0xff] %v4519_v33  ;;  %v2187_v54 = vshll.u32 %v4492_v57, 16  ;;  %v2424_v30 = vrot.slane %v4492_v57, 3  ;;  %v4537_v61 = vsel %vm2120_vm6, %v2163_v28, %v2172_v52  ;;  %v2196_v17 = vshll.u32 %v4503_v2, 16  ;;  %v3760_v28 = vld [vmem:[%s5235_s1 + $0xe8] sm:$0xff]  }
 0x102   : > { %3361 = vmatpush3.bf16.msra.mxu1 %v3756_v43  ;;  %3330 = vmatprep.mubr.msk.bf16.mxu0 %vm3887_vm0, %v3886_v23  ;;  %v4528_v43 = vsel %vm2410_vm5, %v2418_v46, %v2420_v50  ;;  %v2181_v35 = vor.u32 %v2180_v8, %v2177_v22  ;;  %v4540_v12 = vsel %vm2410_vm5, %v2420_v50, %v2422_v24  ;;  %v2193_v46 = vshrl.u32 %v4503_v2, 16 }
 0x103   : > { %3362 = vmatprep.subr.bf16.mxu1 %v3886_v23  ;;  %5255 = vst [vmem:[#allocation5_spill] sm:$0xff] %v4528_v43  ;;  %3415 = vmatpush3.bf16.msra.mxu0 %v3759_v56  ;;  %v2186_v43 = vrot.slane %v2184_v26, 2  ;;  %v2189_v33 = vrot.slane %v2187_v54, 3  ;;  %v4546_v56 = vsel %vm2410_vm5, %v2422_v24, %v2424_v30  ;;  %v2426_v26 = vrot.slane %v4503_v2, 3 }
 0x104   : > { %3416 = vmatprep.subr.bf16.mxu0 %v3886_v23  ;;  %5256 = vst [vmem:[#allocation6_spill] sm:$0xff] %v4546_v56  ;;  %v4555_v50 = vsel %vm2120_vm6, %v2172_v52, %v2181_v35  ;;  %v2195_v22 = vrot.slane %v2193_v46, 2  ;;  %v930_v54 = vrot.slane %v4121_v62, 1  ;;  %v2198_v8 = vrot.slane %v2196_v17, 3  ;;  %v3762_v17 = vld [vmem:[%s5235_s1 + $0xf0] sm:$0xff]  }
 0x105   : > { %3275 = vmatmul.mubr.bf16.gmra.mrb[28].mxu1 %v4183_v47  ;;  %5257 = vst [vmem:[#allocation7_spill] sm:$0xff] %v4555_v50  ;;  %v2190_v24 = vor.u32 %v2189_v33, %v2186_v43  ;;  %v4564_v56 = vsel %vm2410_vm5, %v2424_v30, %v2426_v26  ;;  %v3764_v43 = vld [vmem:[%s5235_s1 + $0xf8] sm:$0xff]  }
 0x106   : > { %3278 = vmatprep.mubr.msk.bf16.mxu1 %vm3887_vm0, %v3886_v23  ;;  %3363 = vmatpush3.bf16.msra.mxu1 %v3758_v39  ;;  %v3763_v39 = vld [vmem:[%s5235_s1 + $0x130] sm:$0xff]   ;;  %v931_v52 = vsel %vm922_vm2, %v4253_v10, %v930_v54  ;;  %v2199_v50 = vor.u32 %v2198_v8, %v2195_v22  ;;  %v3765_v10 = vld [vmem:[%s5235_s1 + $0x138] sm:$0xff]   ;;  %v5258_v22 = vrot.slane %v4206_v63, 1  ;;  %v1381_v8 = vshll.u32 %v4193_v55, 16 }
 0x107   : > { %3364 = vmatprep.subr.bf16.mxu1 %v3886_v23  ;;  %3417 = vmatpush3.bf16.msra.mxu0 %v3761_v4  ;;  %v4570_v46 = vsel %vm2120_vm6, %v2181_v35, %v2190_v24  ;;  %v932_v35 = vrot.slane %v4119_v60, 1 }
 0x108   : > { %3418 = vmatprep.subr.bf16.mxu0 %v3886_v23  ;;  %v4579_v33 = vsel %vm2120_vm6, %v2190_v24, %v2199_v50  ;;  %v2102_v24 = vld [vmem:[#allocation2 + $0x58] sm:$0x7] }
 0x109   : > { %3331 = vmatmul.mubr.bf16.gmra.mrb[28].mxu0 %v931_v52  ;;  %v933_v30 = vsel %vm922_vm2, %v930_v54, %v932_v35  ;;  %v1378_v54 = vshrl.u32 %v4193_v55, 16  ;;  %v2428_v52 = vrot.slane %v2102_v24, 3 }
 0x10a   : > { %3365 = vmatpush3.bf16.msra.mxu1 %v3760_v28  ;;  %3334 = vmatprep.mubr.msk.bf16.mxu0 %vm3887_vm0, %v3886_v23  ;;  %v936_v28 = vrot.slane %v4166_v21, 1 }
 0x10b   : > { %3366 = vmatprep.subr.bf16.mxu1 %v3886_v23  ;;  %3419 = vmatpush3.bf16.msra.mxu0 %v3763_v39  ;;  %v2202_v39 = vshrl.u32 %v2102_v24, 16 }
 0x10c   : > { %3420 = vmatprep.subr.bf16.mxu0 %v3886_v23 }
 0x10d   : > { %3279 = vmatmul.mubr.bf16.gmra.mrb[32].mxu1 %v4230_v16  ;;  %v934_v16 = vrot.slane %v4141_v41, 1 }
 0x10e   : > { %3282 = vmatprep.mubr.msk.bf16.mxu1 %vm3887_vm0, %v3886_v23  ;;  %3367 = vmatpush3.bf16.msra.mxu1 %v3762_v17  ;;  %v2204_v17 = vrot.slane %v2202_v39, 2  ;;  %v5261_v39 = vshrl.u32 %v4341_v44, 16 }
 0x10f   : > { %3368 = vmatprep.subr.bf16.mxu1 %v3886_v23  ;;  %3421 = vmatpush3.bf16.msra.mxu0 %v3765_v10  ;;  %v935_v4 = vsel %vm922_vm2, %v932_v35, %v934_v16  ;;  %v4626_v35 = vsel %vm2410_vm5, %v2426_v26, %v2428_v52  ;;  %v3767_v26 = vld [vmem:[%s5235_s1 + $0x180] sm:$0xff]   ;;  %v5262_v52 = vshll.u32 %v4341_v44, 16 }
 0x110   : > { %3510 = vmatprep.subr.bf16.mxu0 %v3886_v23 }
 0x111   : > { %3335 = vmatmul.mubr.bf16.gmra.mrb[32].mxu0 %v933_v30  ;;  %v1383_v30 = vrot.slane %v1381_v8, 2  ;;  %v3775_v8 = vld [vmem:[%s5235_s1 + $0x1a0] sm:$0xff]  }
 0x112   : > { %3369 = vmatpush3.bf16.msra.mxu1 %v3764_v43  ;;  %3338 = vmatprep.mubr.msk.bf16.mxu0 %vm3887_vm0, %v3886_v23  ;;  %v1380_v43 = vrot.slane %v1378_v54, 1  ;;  %v3772_v54 = vld [vmem:[%s5235_s1 + $0x158] sm:$0xff]  }
 0x113   : > { %3458 = vmatprep.subr.bf16.mxu1 %v3886_v23 }
 0x114   : > { %v1384_v55 = vor.u32 %v1383_v30, %v1380_v43  ;;  %v3776_v30 = vld [vmem:[%s5235_s1 + $0x168] sm:$0xff]  }
 0x115   : > { %3283 = vmatmul.mubr.bf16.gmra.mrb[36].mxu1 %v4121_v62  ;;  %v937_v62 = vsel %vm922_vm2, %v934_v16, %v936_v28 }
 0x116   : > { %3286 = vmatprep.mubr.msk.bf16.mxu1 %vm3887_vm0, %v3886_v23 }
 0x119   : > { %3339 = vmatmul.mubr.bf16.gmra.mrb[36].mxu0 %v935_v4  ;;  %v1393_v4 = vsel %vm1376_vm3, %v1384_v55, %v4255_v38  ;;  %v3768_v38 = vld [vmem:[%s5235_s1 + $0x148] sm:$0xff]  }
 0x11a   : > { %3342 = vmatprep.mubr.msk.bf16.mxu0 %vm3887_vm0, %v3886_v23 }
 0x11d   : > { %3287 = vmatmul.mubr.bf16.gmra.mrb[40].mxu1 %v4119_v60  ;;  %v939_v60 = vsel %vm922_vm2, %v936_v28, %v5258_v22  ;;  %v5259_v28 = vshrl.u32 %v4246_v32, 16  ;;  %v5260_v22 = vshll.u32 %v4246_v32, 16 }
 0x11e   : > { %3290 = vmatprep.mubr.msk.bf16.mxu1 %vm3887_vm0, %v3886_v23 }
 0x121   : > { %3343 = vmatmul.mubr.bf16.gmra.mrb[40].mxu0 %v937_v62  ;;  %v1406_v62 = vrot.slane %v5259_v28, 1 }
 0x122   : > { %3346 = vmatprep.mubr.msk.bf16.mxu0 %vm3887_vm0, %v3886_v23 }
 0x125   : > { %3291 = vmatmul.mubr.bf16.gmra.mrb[44].mxu1 %v4141_v41  ;;  %v2205_v41 = vshll.u32 %v2102_v24, 16 }
 0x126   : > { %3294 = vmatprep.mubr.msk.bf16.mxu1 %vm3887_vm0, %v3886_v23 }
 0x127   : > { %v2207_v10 = vrot.slane %v2205_v41, 3  ;;  %v1415_v41 = vrot.slane %v5261_v39, 1 }
 0x129   : > { %3347 = vmatmul.mubr.bf16.gmra.mrb[44].mxu0 %v939_v60  ;;  %v2208_v16 = vor.u32 %v2207_v10, %v2204_v17  ;;  %v1409_v60 = vrot.slane %v5260_v22, 2  ;;  %v1418_v17 = vrot.slane %v5262_v52, 2  ;;  %v3774_v10 = vld [vmem:[%s5235_s1 + $0x160] sm:$0xff]  }
 0x12a   : > { %3350 = vmatprep.mubr.msk.bf16.mxu0 %vm3887_vm0, %v3886_v23 }
 0x12b   : > { %v1410_v24 = vor.u32 %v1409_v60, %v1406_v62  ;;  %v1419_v43 = vor.u32 %v1418_v17, %v1415_v41  ;;  %v3780_v62 = vld [vmem:[%s5235_s1 + $0x178] sm:$0xff]   ;;  %v5266_v60 = vshrl.u32 %v4361_v7, 16  ;;  %v5268_v41 = vshrl.u32 %v4301_v11, 16 }
 0x12c   : > { %v5269_v17 = vshll.u32 %v4301_v11, 16 }
 0x12d   : > { %3295 = vmatmul.mubr.bf16.gmra.mrb[48].mxu1 %v4166_v21  ;;  %v4632_v21 = vsel %vm2120_vm6, %v2199_v50, %v2208_v16  ;;  %v3771_v50 = vld [vmem:[%s5235_s1 + $0x190] sm:$0xff]   ;;  %v1166_v16 = vrot.slane %v4341_v44, 1  ;;  %v1420_v55 = vsel %vm1376_vm3, %v1410_v24, %v1419_v43  ;;  %v1442_v52 = vrot.slane %v5268_v41, 1 }
 0x12e   : > { %3298 = vmatprep.mubr.msk.bf16.mxu1 %vm3887_vm0, %v3886_v23  ;;  %v3778_v44 = vld [vmem:[%s5235_s1 + $0x170] sm:$0xff]  }
 0x131   : > { %3351 = vmatmul.mubr.bf16.gmra.mrb[48].mxu0 %v4311_v27  ;;  %v3766_v27 = vld [vmem:[%s5235_s1 + $0x140] sm:$0xff]  }
 0x132   : > { %3422 = vmatprep.mubr.msk.bf16.mxu0 %vm3887_vm0, %v3886_v23 }
 0x135   : > { %3299 = vmatmul.mubr.bf16.gmra.mrb[52].mxu1 %v4206_v63  ;;  %v3769_v63 = vld [vmem:[%s5235_s1 + $0x188] sm:$0xff]  }
 0x136   : > { %3370 = vmatprep.mubr.msk.bf16.mxu1 %vm3887_vm0, %v3886_v23 }
 0x139   : > { %3423 = vmatmul.mubr.bf16.vlgmr.msra.gmra.mrb[52].mxu0 %v1393_v4 }
 0x13a   : > { %3511 = vmatpush3.bf16.msra.mxu0 %v3767_v26  ;;  %3426 = vmatprep.mubr.msk.bf16.mxu0 %vm3887_vm0, %v3886_v23  ;;  %v5263_v26 = vshrl.u32 %v4354_v1, 16 }
 0x13b   : > { %3512 = vmatprep.subr.bf16.mxu0 %v3886_v23 }
 0x13c   : > { %v1424_v4 = vrot.slane %v5263_v26, 1 }
 0x13d   : > { %3371 = vmatmul.mubr.bf16.vlgmr.msra.gmra.mrb[56].mxu1 %v4228_v18  ;;  %v3770_v18 = vld [vmem:[%s5235_s1 + $0x150] sm:$0xff]  }
 0x13e   : > { %3459 = vmatpush3.bf16.msra.mxu1 %v3766_v27  ;;  %3374 = vmatprep.mubr.msk.bf16.mxu1 %vm3887_vm0, %v3886_v23  ;;  %v5264_v27 = vshll.u32 %v4354_v1, 16 }
 0x13f   : > { %3460 = vmatprep.subr.bf16.mxu1 %v3886_v23  ;;  %3513 = vmatpush3.bf16.msra.mxu0 %v3769_v63 }
 0x140   : > { %3514 = vmatprep.subr.bf16.mxu0 %v3886_v23  ;;  %v1427_v63 = vrot.slane %v5264_v27, 2 }
 0x141   : > { %3427 = vmatmul.mubr.bf16.gmra.mrb[56].mxu0 %v4294_v0  ;;  %v3773_v0 = vld [vmem:[%s5235_s1 + $0x198] sm:$0xff]  }
 0x142   : > { %3461 = vmatpush3.bf16.msra.mxu1 %v3768_v38  ;;  %3430 = vmatprep.mubr.msk.bf16.mxu0 %vm3887_vm0, %v3886_v23  ;;  %v5265_v38 = vrot.slane %v4246_v32, 1  ;;  %v1428_v28 = vor.u32 %v1427_v63, %v1424_v4  ;;  %v1168_v32 = vrot.slane %v4354_v1, 1  ;;  %v3782_v4 = vld [vmem:[%s5235_s1 + $0x1c0] sm:$0xff]   ;;  %v3784_v63 = vld [vmem:[%s5235_s1 + $0x1c8] sm:$0xff]  }
 0x143   : > { %3462 = vmatprep.subr.bf16.mxu1 %v3886_v23  ;;  %3515 = vmatpush3.bf16.msra.mxu0 %v3771_v50 }
 0x144   : > { %3516 = vmatprep.subr.bf16.mxu0 %v3886_v23  ;;  %v1167_v50 = vsel %vm922_vm2, %v5265_v38, %v1166_v16  ;;  %v1429_v22 = vsel %vm1376_vm3, %v1419_v43, %v1428_v28  ;;  %v1169_v1 = vsel %vm922_vm2, %v1166_v16, %v1168_v32  ;;  %v3786_v38 = vld [vmem:[%s5235_s1 + $0x1d0] sm:$0xff]  }
 0x145   : > { %3375 = vmatmul.mubr.bf16.gmra.mrb[60].mxu1 %v4352_v3  ;;  %v1411_v3 = vsel %vm1376_vm3, %v4283_v59, %v1410_v24  ;;  %v3777_v59 = vld [vmem:[%s5235_s1 + $0x1a8] sm:$0xff]  }
 0x146   : > { %3378 = vmatprep.mubr.msk.bf16.mxu1 %vm3887_vm0, %v3886_v23  ;;  %3463 = vmatpush3.bf16.msra.mxu1 %v3770_v18  ;;  %v3781_v18 = vld [vmem:[%s5235_s1 + $0x1b8] sm:$0xff]  }
 0x147   : > { %3464 = vmatprep.subr.bf16.mxu1 %v3886_v23  ;;  %3517 = vmatpush3.bf16.msra.mxu0 %v3773_v0  ;;  %v1433_v0 = vrot.slane %v5266_v60, 1 }
 0x148   : > { %3518 = vmatprep.subr.bf16.mxu0 %v3886_v23 }
 0x149   : > { %3431 = vmatmul.mubr.bf16.gmra.mrb[60].mxu0 %v1411_v3  ;;  %v1170_v3 = vrot.slane %v4361_v7, 1 }
 0x14a   : > { %3465 = vmatpush3.bf16.msra.mxu1 %v3772_v54  ;;  %3434 = vmatprep.mubr.msk.bf16.mxu0 %vm3887_vm0, %v3886_v23  ;;  %v5267_v54 = vshll.u32 %v4361_v7, 16 }
 0x14b   : > { %3466 = vmatprep.subr.bf16.mxu1 %v3886_v23  ;;  %3519 = vmatpush3.bf16.msra.mxu0 %v3775_v8 }
 0x14c   : > { %3520 = vmatprep.subr.bf16.mxu0 %v3886_v23  ;;  %v1436_v24 = vrot.slane %v5267_v54, 2 }
 0x14d   : > { %3379 = vmatmul.mubr.bf16.gmra.mrb[64].mxu1 %v4280_v45  ;;  %v3779_v45 = vld [vmem:[%s5235_s1 + $0x1b0] sm:$0xff]  }
 0x14e   : > { %3382 = vmatprep.mubr.msk.bf16.mxu1 %vm3887_vm0, %v3886_v23  ;;  %3467 = vmatpush3.bf16.msra.mxu1 %v3774_v10  ;;  %v1437_v8 = vor.u32 %v1436_v24, %v1433_v0  ;;  %v1445_v10 = vrot.slane %v5269_v17, 2  ;;  %v3797_v0 = vld [vmem:[%s5235_s1 + $0x238] sm:$0xff]  }
 0x14f   : > { %3468 = vmatprep.subr.bf16.mxu1 %v3886_v23  ;;  %3521 = vmatpush3.bf16.msra.mxu0 %v3777_v59  ;;  %v1171_v59 = vsel %vm922_vm2, %v1168_v32, %v1170_v3  ;;  %v3795_v32 = vld [vmem:[%s5235_s1 + $0x230] sm:$0xff]  }
 0x150   : > { %3522 = vmatprep.subr.bf16.mxu0 %v3886_v23  ;;  %v1438_v39 = vsel %vm1376_vm3, %v1428_v28, %v1437_v8  ;;  %v1446_v43 = vor.u32 %v1445_v10, %v1442_v52  ;;  %v3793_v28 = vld [vmem:[%s5235_s1 + $0x228] sm:$0xff]  }
 0x151   : > { %3435 = vmatmul.mubr.bf16.gmra.mrb[64].mxu0 %v1420_v55  ;;  %v1904_v55 = vrot.slane %v4404_v25, 2 }
 0x152   : > { %3469 = vmatpush3.bf16.msra.mxu1 %v3776_v30  ;;  %3438 = vmatprep.mubr.msk.bf16.mxu0 %vm3887_vm0, %v3886_v23  ;;  %v1447_v7 = vsel %vm1376_vm3, %v1437_v8, %v1446_v43  ;;  %v5270_v30 = vrot.slane %v4301_v11, 1  ;;  %v1646_v11 = vld [vmem:[#allocation2 + $0x8] sm:$0xfc] }
 0x153   : > { %3470 = vmatprep.subr.bf16.mxu1 %v3886_v23  ;;  %3523 = vmatpush3.bf16.msra.mxu0 %v3779_v45  ;;  %v1456_v45 = vsel %vm1376_vm3, %v1446_v43, %v4363_v34  ;;  %v1903_v34 = vrot.slane %v4391_v37, 2  ;;  %v1667_v26 = vrot.slane %v1646_v11, 2  ;;  %v5271_v37 = vrot.slane %v4183_v47, 2  ;;  %v3787_v47 = vld [vmem:[%s5235_s1 + $0x210] sm:$0xff]  }
 0x154   : > { %3524 = vmatprep.subr.bf16.mxu0 %v3886_v23  ;;  %v1173_v16 = vsel %vm922_vm2, %v1170_v3, %v5270_v30  ;;  %v1916_v30 = vrot.slane %v4492_v57, 2 }
 0x155   : > { %3383 = vmatmul.mubr.bf16.gmra.mrb[68].mxu1 %v1167_v50  ;;  %v1669_v27 = vsel %vm1666_vm4, %v1667_v26, %v5271_v37  ;;  %v3789_v50 = vld [vmem:[%s5235_s1 + $0x218] sm:$0xff]  }
 0x156   : > { %3386 = vmatprep.mubr.msk.bf16.mxu1 %vm3887_vm0, %v3886_v23  ;;  %3471 = vmatpush3.bf16.msra.mxu1 %v3778_v44  ;;  %v1907_v44 = vsel %vm1666_vm4, %v1904_v55, %v4375_v19  ;;  %v3788_v19 = vld [vmem:[%s5235_s1 + $0x1d8] sm:$0xff]  }
 0x157   : > { %3472 = vmatprep.subr.bf16.mxu1 %v3886_v23  ;;  %3525 = vmatpush3.bf16.msra.mxu0 %v3781_v18  ;;  %v3791_v18 = vld [vmem:[%s5235_s1 + $0x220] sm:$0xff]  }
 0x158   : > { %3614 = vmatprep.subr.bf16.mxu0 %v3886_v23 }
 0x159   : > { %3439 = vmatmul.mubr.bf16.gmra.mrb[68].mxu0 %v1429_v22 }
 0x15a   : > { %3473 = vmatpush3.bf16.msra.mxu1 %v3780_v62  ;;  %3442 = vmatprep.mubr.msk.bf16.mxu0 %vm3887_vm0, %v3886_v23  ;;  %v3792_v62 = vld [vmem:[%s5235_s1 + $0x1e8] sm:$0xff]  }
 0x15b   : > { %3562 = vmatprep.subr.bf16.mxu1 %v3886_v23 }
 0x15d   : > { %3387 = vmatmul.mubr.bf16.gmra.mrb[72].mxu1 %v1169_v1  ;;  %v3796_v1 = vld [vmem:[%s5235_s1 + $0x1f8] sm:$0xff]  }
 0x15e   : > { %3390 = vmatprep.mubr.msk.bf16.mxu1 %vm3887_vm0, %v3886_v23 }
 0x161   : > { %3443 = vmatmul.mubr.bf16.gmra.mrb[72].mxu0 %v1438_v39 }
 0x162   : > { %3446 = vmatprep.mubr.msk.bf16.mxu0 %vm3887_vm0, %v3886_v23 }
 0x165   : > { %3391 = vmatmul.mubr.bf16.gmra.mrb[76].mxu1 %v1171_v59 }
 0x166   : > { %3394 = vmatprep.mubr.msk.bf16.mxu1 %vm3887_vm0, %v3886_v23 }
 0x169   : > { %3447 = vmatmul.mubr.bf16.gmra.mrb[76].mxu0 %v1447_v7 }
 0x16a   : > { %3450 = vmatprep.mubr.msk.bf16.mxu0 %vm3887_vm0, %v3886_v23 }
 0x16d   : > { %3395 = vmatmul.mubr.bf16.gmra.mrb[80].mxu1 %v1173_v16 }
 0x16e   : > { %3398 = vmatprep.mubr.msk.bf16.mxu1 %vm3887_vm0, %v3886_v23 }
 0x171   : > { %3451 = vmatmul.mubr.bf16.gmra.mrb[80].mxu0 %v1456_v45 }
 0x172   : > { %3454 = vmatprep.mubr.msk.bf16.mxu0 %vm3887_vm0, %v3886_v23 }
 0x175   : > { %3399 = vmatmul.mubr.bf16.gmra.mrb[84].mxu1 %v4329_v42  ;;  %v3783_v42 = vld [vmem:[%s5235_s1 + $0x200] sm:$0xff]  }
 0x176   : > { %3402 = vmatprep.mubr.msk.bf16.mxu1 %vm3887_vm0, %v3886_v23 }
 0x179   : > { %3455 = vmatmul.mubr.bf16.gmra.mrb[84].mxu0 %v4380_v31  ;;  %v1905_v31 = vsel %vm1666_vm4, %v1903_v34, %v1904_v55  ;;  %v1917_v34 = vsel %vm1666_vm4, %v4414_v49, %v1916_v30 }
 0x17a   : > { %3526 = vmatprep.mubr.msk.bf16.mxu0 %vm3887_vm0, %v3886_v23 }
 0x17d   : > { %3403 = vmatmul.mubr.bf16.gmra.mrb[88].mxu1 %v4344_v14  ;;  %v3785_v14 = vld [vmem:[%s5235_s1 + $0x208] sm:$0xff]  }
 0x17e   : > { %3474 = vmatprep.mubr.msk.bf16.mxu1 %vm3887_vm0, %v3886_v23 }
 0x181   : > { %3527 = vmatmul.mubr.bf16.vlgmr.msra.gmra.mrb[88].mxu0 %v1905_v31  ;;  %v1918_v31 = vrot.slane %v4503_v2, 2 }
 0x182   : > { %3615 = vmatpush3.bf16.msra.mxu0 %v3783_v42  ;;  %3530 = vmatprep.mubr.msk.bf16.mxu0 %vm3887_vm0, %v3886_v23 }
 0x183   : > { %3616 = vmatprep.subr.bf16.mxu0 %v3886_v23 }
 0x185   : > { %3475 = vmatmul.mubr.bf16.vlgmr.msra.gmra.mrb[92].mxu1 %v1669_v27  ;;  %v1919_v27 = vsel %vm1666_vm4, %v1916_v30, %v1918_v31 }
 0x186   : > { %3563 = vmatpush3.bf16.msra.mxu1 %v3782_v4  ;;  %3478 = vmatprep.mubr.msk.bf16.mxu1 %vm3887_vm0, %v3886_v23 }
 0x187   : > { %3564 = vmatprep.subr.bf16.mxu1 %v3886_v23  ;;  %3617 = vmatpush3.bf16.msra.mxu0 %v3785_v14 }
 0x188   : > { %3618 = vmatprep.subr.bf16.mxu0 %v3886_v23 }
 0x189   : > { %3531 = vmatmul.mubr.bf16.gmra.mrb[92].mxu0 %v1907_v44 }
 0x18a   : > { %3565 = vmatpush3.bf16.msra.mxu1 %v3784_v63  ;;  %3534 = vmatprep.mubr.msk.bf16.mxu0 %vm3887_vm0, %v3886_v23  ;;  %v1875_v63 = vld [vmem:[#allocation2 + $0x58] sm:$0x3] }
 0x18b   : > { %3566 = vmatprep.subr.bf16.mxu1 %v3886_v23  ;;  %3619 = vmatpush3.bf16.msra.mxu0 %v3787_v47  ;;  %v1920_v2 = vrot.slane %v1875_v63, 2 }
 0x18c   : > { %3620 = vmatprep.subr.bf16.mxu0 %v3886_v23 }
 0x18d   : > { %3479 = vmatmul.mubr.bf16.gmra.mrb[96].mxu1 %v4385_v9  ;;  %v3790_v9 = vld [vmem:[%s5235_s1 + $0x1e0] sm:$0xff]  }
 0x18e   : > { %3482 = vmatprep.mubr.msk.bf16.mxu1 %vm3887_vm0, %v3886_v23  ;;  %3567 = vmatpush3.bf16.msra.mxu1 %v3786_v38 }
 0x18f   : > { %3568 = vmatprep.subr.bf16.mxu1 %v3886_v23  ;;  %3621 = vmatpush3.bf16.msra.mxu0 %v3789_v50 }
 0x190   : > { %3622 = vmatprep.subr.bf16.mxu0 %v3886_v23 }
 0x191   : > { %3535 = vmatmul.mubr.bf16.gmra.mrb[96].mxu0 %v4408_v13 }
 0x192   : > { %3569 = vmatpush3.bf16.msra.mxu1 %v3788_v19  ;;  %3538 = vmatprep.mubr.msk.bf16.mxu0 %vm3887_vm0, %v3886_v23 }
 0x193   : > { %3570 = vmatprep.subr.bf16.mxu1 %v3886_v23  ;;  %3623 = vmatpush3.bf16.msra.mxu0 %v3791_v18  ;;  %v1921_v18 = vsel %vm1666_vm4, %v1918_v31, %v1920_v2 }
 0x194   : > { %3624 = vmatprep.subr.bf16.mxu0 %v3886_v23 }
 0x195   : > { %3483 = vmatmul.mubr.bf16.gmra.mrb[100].mxu1 %v4395_v40  ;;  %v3794_v40 = vld [vmem:[%s5235_s1 + $0x1f0] sm:$0xff]  }
 0x196   : > { %3486 = vmatprep.mubr.msk.bf16.mxu1 %vm3887_vm0, %v3886_v23  ;;  %3571 = vmatpush3.bf16.msra.mxu1 %v3790_v9 }
 0x197   : > { %3572 = vmatprep.subr.bf16.mxu1 %v3886_v23  ;;  %3625 = vmatpush3.bf16.msra.mxu0 %v3793_v28 }
 0x198   : > { %3626 = vmatprep.subr.bf16.mxu0 %v3886_v23 }
 0x199   : > { %3539 = vmatmul.mubr.bf16.gmra.mrb[100].mxu0 %v4411_v48 }
 0x19a   : > { %3573 = vmatpush3.bf16.msra.mxu1 %v3792_v62  ;;  %v4862_v22 = vpop.f32.mrb[0].mxu1  ;;  %3542 = vmatprep.mubr.msk.bf16.mxu0 %vm3887_vm0, %v3886_v23 }
 0x19b   : > { %3574 = vmatprep.subr.bf16.mxu1 %v3886_v23  ;;  %v3232_v60 = vpop.f32.mrb[1].mxu1  ;;  %3627 = vmatpush3.bf16.msra.mxu0 %v3795_v32 }
 0x19c   : > { %v4871_v54 = vpop.f32.mrb[2].mxu1  ;;  %3628 = vmatprep.subr.bf16.mxu0 %v3886_v23 }
 0x19d   : > { %3487 = vmatmul.mubr.bf16.gmra.mrb[104].mxu1 %v4408_v13  ;;  %v3233_v24 = vpop.f32.mrb[3].mxu1 }
 0x19e   : > { %3490 = vmatprep.mubr.msk.bf16.mxu1 %vm3887_vm0, %v3886_v23  ;;  %3575 = vmatpush3.bf16.msra.mxu1 %v3794_v40 }
 0x19f   : > { %3576 = vmatprep.subr.bf16.mxu1 %v3886_v23  ;;  %3629 = vmatpush3.bf16.msra.mxu0 %v3797_v0 }
 0x1a1   : > { %3543 = vmatmul.mubr.bf16.gmra.mrb[104].mxu0 %v4419_v29 }
 0x1a2   : > { %3577 = vmatpush3.bf16.msra.mxu1 %v3796_v1  ;;  %v4881_v13 = vpop.f32.mrb[4].mxu1  ;;  %3546 = vmatprep.mubr.msk.bf16.mxu0 %vm3887_vm0, %v3886_v23 }
 0x1a3   : > { %v3236_v8 = vpop.f32.mrb[5].mxu1 }
 0x1a4   : > { %v670_v3 = vpop.f32.mrb[0].mxu0  ;;  %v4886_v39 = vpop.f32.mrb[6].mxu1 }
 0x1a5   : > { %3491 = vmatmul.mubr.bf16.gmra.mrb[108].mxu1 %v4411_v48  ;;  %v3216_v41 = vpop.f32.mrb[1].mxu0  ;;  %v3237_v52 = vpop.f32.mrb[7].mxu1 }
 0x1a6   : > { %3494 = vmatprep.mubr.msk.bf16.mxu1 %vm3887_vm0, %v3886_v23  ;;  %v673_v17 = vpop.f32.mrb[2].mxu0  ;;  %v5272_v41 = vrot.slane %v4404_v25, 3 }
 0x1a7   : > { %v3217_v10 = vpop.f32.mrb[3].mxu0 }
 0x1a9   : > { %3547 = vmatmul.mubr.bf16.gmra.mrb[108].mxu0 %v4430_v5 }
 0x1aa   : > { %v4891_v59 = vpop.f32.mrb[8].mxu1  ;;  %3550 = vmatprep.mubr.msk.bf16.mxu0 %vm3887_vm0, %v3886_v23 }
 0x1ab   : > { %v3240_v43 = vpop.f32.mrb[9].mxu1 }
 0x1ac   : > { %v4896_v48 = vpop.f32.mrb[4].mxu0  ;;  %v4898_v7 = vpop.f32.mrb[10].mxu1 }
 0x1ad   : > { %3495 = vmatmul.mubr.bf16.gmra.mrb[112].mxu1 %v4419_v29  ;;  %v3220_v16 = vpop.f32.mrb[5].mxu0  ;;  %v3241_v45 = vpop.f32.mrb[11].mxu1 }
 0x1ae   : > { %3498 = vmatprep.mubr.msk.bf16.mxu1 %vm3887_vm0, %v3886_v23  ;;  %v4903_v11 = vpop.f32.mrb[6].mxu0 }
 0x1af   : > { %v3221_v55 = vpop.f32.mrb[7].mxu0 }
 0x1b1   : > { %3551 = vmatmul.mubr.bf16.gmra.mrb[112].mxu0 %v1917_v34 }
 0x1b2   : > { %v4907_v42 = vpop.f32.mrb[12].mxu1  ;;  %3554 = vmatprep.mubr.msk.bf16.mxu0 %vm3887_vm0, %v3886_v23 }
 0x1b3   : > { %v3244_v29 = vpop.f32.mrb[13].mxu1 }
 0x1b4   : > { %v4912_v57 = vpop.f32.mrb[8].mxu0  ;;  %v4914_v26 = vpop.f32.mrb[14].mxu1 }
 0x1b5   : > { %3499 = vmatmul.mubr.bf16.gmra.mrb[116].mxu1 %v4430_v5  ;;  %v3224_v4 = vpop.f32.mrb[9].mxu0  ;;  %v3245_v14 = vpop.f32.mrb[15].mxu1 }
 0x1b6   : > { %3502 = vmatprep.mubr.msk.bf16.mxu1 %vm3887_vm0, %v3886_v23  ;;  %v4919_v49 = vpop.f32.mrb[10].mxu0 }
 0x1b7   : > { %v3225_v37 = vpop.f32.mrb[11].mxu0 }
 0x1b9   : > { %3555 = vmatmul.mubr.bf16.gmra.mrb[116].mxu0 %v1919_v27 }
 0x1ba   : > { %3558 = vmatprep.mubr.msk.bf16.mxu0 %vm3887_vm0, %v3886_v23 }
 0x1bc   : > { %v4925_v5 = vpop.f32.mrb[12].mxu0 }
 0x1bd   : > { %3503 = vmatmul.mubr.bf16.gmra.mrb[120].mxu1 %v4437_v36  ;;  %v3228_v47 = vpop.f32.mrb[13].mxu0  ;;  %v2390_v36 = vld [vmem:[#allocation2 + $0x10] sm:$0xf8] }
 0x1be   : > { %3506 = vmatprep.mubr.msk.bf16.mxu1 %vm3887_vm0, %v3886_v23  ;;  %v4929_v44 = vpop.f32.mrb[14].mxu0  ;;  %v2411_v60 = vrot.slane %v2390_v36, 3 }
 0x1bf   : > { %v3229_v50 = vpop.f32.mrb[15].mxu0 }
 0x1c0   : > { %v4931_v38 = vpop.f32.mrb[16].mxu1  ;;  %v2413_v52 = vsel %vm2410_vm5, %v2411_v60, %v5272_v41  ;;  %v5274_v41 = vld [vmem:[#allocation4_spill] sm:$0xff] }
 0x1c1   : > { %v3248_v19 = vpop.f32.mrb[17].mxu1  ;;  %3559 = vmatmul.mubr.bf16.gmra.mrb[120].mxu0 %v1921_v18 }
 0x1c2   : > { %v4934_v9 = vpop.f32.mrb[18].mxu1  ;;  %3630 = vmatprep.mubr.msk.bf16.mxu0 %vm3887_vm0, %v3886_v23 }
 0x1c3   : > { %v3249_v28 = vpop.f32.mrb[19].mxu1 }
 0x1c4   : > { %v1033_v62 = vpop.f32.mrb[16].mxu0 }
 0x1c5   : > { %3507 = vmatmul.mubr.bf16.gmra.mrb[124].mxu1 %v4440_v15  ;;  %v3320_v32 = vpop.f32.mrb[17].mxu0 }
 0x1c6   : > { %3578 = vmatprep.mubr.msk.bf16.mxu1 %vm3887_vm0, %v3886_v23  ;;  %v1036_v40 = vpop.f32.mrb[18].mxu0 }
 0x1c7   : > { %v3321_v24 = vpop.f32.mrb[19].mxu0 }
 0x1c8   : > { %v823_v0 = vpop.f32.mrb[20].mxu1 }
 0x1c9   : > { %v824_v1 = vadd.f32 %v823_v0, %v670_v3  ;;  %v3268_v8 = vpop.f32.mrb[21].mxu1  ;;  %3631 = vmatmul.mubr.bf16.vlgmr.msra.gmra.mrb[124].mxu0 %v2413_v52  ;;  %v5273_v0 = vld [vmem:[#allocation3_spill] sm:$0xff] }
 0x1ca   : > { %v826_v10 = vpop.f32.mrb[22].mxu1  ;;  %3634 = vmatprep.mubr.msk.bf16.mxu0 %vm3887_vm0, %v3886_v23 }
 0x1cb   : > { %v827_v43 = vadd.f32 %v826_v10, %v673_v17  ;;  %v4944_v30 = vadd.f32 %v1033_v62, %v824_v1  ;;  %v3269_v15 = vpop.f32.mrb[23].mxu1 }
 0x1cc   : > { %v1041_v45 = vpop.f32.mrb[20].mxu0 }
 0x1cd   : > { %v4948_v16 = vadd.f32 %v1036_v40, %v827_v43  ;;  %3579 = vmatmul.mubr.bf16.vlgmr.msra.gmra.mrb[128].mxu1 %v4495_v51  ;;  %v3324_v3 = vpop.f32.mrb[21].mxu0 }
 0x1ce   : > { %3582 = vmatprep.mubr.msk.bf16.mxu1 %vm3887_vm0, %v3886_v23  ;;  %v1044_v25 = vpop.f32.mrb[22].mxu0 }
 0x1cf   : > { %v3325_v34 = vpop.f32.mrb[23].mxu0 }
 0x1d0   : > { %v831_v55 = vpop.f32.mrb[24].mxu1 }
 0x1d1   : > { %v832_v17 = vadd.f32 %v831_v55, %v4896_v48  ;;  %v3272_v29 = vpop.f32.mrb[25].mxu1  ;;  %3635 = vmatmul.mubr.bf16.gmra.mrb[128].mxu0 %v4476_v58 }
 0x1d2   : > { %v834_v31 = vpop.f32.mrb[26].mxu1  ;;  %3638 = vmatprep.mubr.msk.bf16.mxu0 %vm3887_vm0, %v3886_v23 }
 0x1d3   : > { %v835_v4 = vadd.f32 %v834_v31, %v4903_v11  ;;  %v4956_v14 = vadd.f32 %v1041_v45, %v832_v17  ;;  %v3273_v37 = vpop.f32.mrb[27].mxu1 }
 0x1d4   : > { %v1049_v27 = vpop.f32.mrb[24].mxu0 }
 0x1d5   : > { %v4960_v51 = vadd.f32 %v1044_v25, %v835_v4  ;;  %3583 = vmatmul.mubr.bf16.gmra.mrb[132].mxu1 %v4498_v20  ;;  %v3328_v63 = vpop.f32.mrb[25].mxu0  ;;  %v5275_v25 = vld [vmem:[#allocation5_spill] sm:$0xff] }
 0x1d6   : > { %3586 = vmatprep.mubr.msk.bf16.mxu1 %vm3887_vm0, %v3886_v23  ;;  %v1052_v48 = vpop.f32.mrb[26].mxu0 }
 0x1d7   : > { %v3329_v58 = vpop.f32.mrb[27].mxu0 }
 0x1d8   : > { %v839_v2 = vpop.f32.mrb[28].mxu1 }
 0x1d9   : > { %v840_v11 = vadd.f32 %v839_v2, %v4912_v57  ;;  %v3276_v47 = vpop.f32.mrb[29].mxu1  ;;  %3639 = vmatmul.mubr.bf16.gmra.mrb[132].mxu0 %v4484_v53 }
 0x1da   : > { %v842_v50 = vpop.f32.mrb[30].mxu1  ;;  %3642 = vmatprep.mubr.msk.bf16.mxu0 %vm3887_vm0, %v3886_v23  ;;  %v5276_v47 = vld [vmem:[#allocation7_spill] sm:$0xff] }
 0x1db   : > { %v843_v19 = vadd.f32 %v842_v50, %v4919_v49  ;;  %v4968_v18 = vadd.f32 %v1049_v27, %v840_v11  ;;  %v3277_v28 = vpop.f32.mrb[31].mxu1 }
 0x1dc   : > { %v1057_v36 = vpop.f32.mrb[28].mxu0 }
 0x1dd   : > { %v4972_v20 = vadd.f32 %v1052_v48, %v843_v19  ;;  %3587 = vmatmul.mubr.bf16.gmra.mrb[136].mxu1 %v4506_v6  ;;  %v3332_v62 = vpop.f32.mrb[29].mxu0 }
 0x1de   : > { %3590 = vmatprep.mubr.msk.bf16.mxu1 %vm3887_vm0, %v3886_v23  ;;  %v1060_v57 = vpop.f32.mrb[30].mxu0 }
 0x1df   : > { %v3333_v53 = vpop.f32.mrb[31].mxu0 }
 0x1e0   : > { %v847_v32 = vpop.f32.mrb[32].mxu1 }
 0x1e1   : > { %v848_v49 = vadd.f32 %v847_v32, %v4925_v5  ;;  %v3280_v40 = vpop.f32.mrb[33].mxu1  ;;  %3643 = vmatmul.mubr.bf16.gmra.mrb[136].mxu0 %v5273_v0 }
 0x1e2   : > { %v850_v60 = vpop.f32.mrb[34].mxu1  ;;  %3646 = vmatprep.mubr.msk.bf16.mxu0 %vm3887_vm0, %v3886_v23 }
 0x1e3   : > { %v851_v24 = vadd.f32 %v850_v60, %v4929_v44  ;;  %v4980_v1 = vadd.f32 %v1057_v36, %v848_v49  ;;  %v3281_v8 = vpop.f32.mrb[35].mxu1 }
 0x1e4   : > { %v1065_v52 = vpop.f32.mrb[32].mxu0 }
 0x1e5   : > { %v4984_v6 = vadd.f32 %v1060_v57, %v851_v24  ;;  %3591 = vmatmul.mubr.bf16.gmra.mrb[140].mxu1 %v5274_v41  ;;  %v3336_v10 = vpop.f32.mrb[33].mxu0  ;;  %v5277_v57 = vld [vmem:[#allocation6_spill] sm:$0xff] }
 0x1e6   : > { %3594 = vmatprep.mubr.msk.bf16.mxu1 %vm3887_vm0, %v3886_v23  ;;  %v1068_v5 = vpop.f32.mrb[34].mxu0 }
 0x1e7   : > { %v3337_v15 = vpop.f32.mrb[35].mxu0 }
 0x1e8   : > { %v855_v43 = vpop.f32.mrb[36].mxu1 }
 0x1e9   : > { %v856_v44 = vadd.f32 %v855_v43, %v4862_v22  ;;  %v3284_v45 = vpop.f32.mrb[37].mxu1  ;;  %3647 = vmatmul.mubr.bf16.gmra.mrb[140].mxu0 %v5275_v25 }
 0x1ea   : > { %v858_v3 = vpop.f32.mrb[38].mxu1  ;;  %3650 = vmatprep.mubr.msk.bf16.mxu0 %vm3887_vm0, %v3886_v23 }
 0x1eb   : > { %v859_v55 = vadd.f32 %v858_v3, %v4871_v54  ;;  %v4992_v34 = vadd.f32 %v1065_v52, %v856_v44  ;;  %v3285_v17 = vpop.f32.mrb[39].mxu1 }
 0x1ec   : > { %v1073_v31 = vpop.f32.mrb[36].mxu0 }
 0x1ed   : > { %v4996_v29 = vadd.f32 %v1068_v5, %v859_v55  ;;  %3595 = vmatmul.mubr.bf16.gmra.mrb[144].mxu1 %v4537_v61  ;;  %v3340_v4 = vpop.f32.mrb[37].mxu0 }
 0x1ee   : > { %3598 = vmatprep.mubr.msk.bf16.mxu1 %vm3887_vm0, %v3886_v23  ;;  %v1076_v22 = vpop.f32.mrb[38].mxu0 }
 0x1ef   : > { %v3341_v27 = vpop.f32.mrb[39].mxu0 }
 0x1f0   : > { %v863_v37 = vpop.f32.mrb[40].mxu1 }
 0x1f1   : > { %v864_v54 = vadd.f32 %v863_v37, %v4881_v13  ;;  %v3288_v63 = vpop.f32.mrb[41].mxu1  ;;  %3651 = vmatmul.mubr.bf16.gmra.mrb[144].mxu0 %v4540_v12 }
 0x1f2   : > { %v866_v48 = vpop.f32.mrb[42].mxu1  ;;  %3654 = vmatprep.mubr.msk.bf16.mxu0 %vm3887_vm0, %v3886_v23 }
 0x1f3   : > { %v867_v2 = vadd.f32 %v866_v48, %v4886_v39  ;;  %v5004_v58 = vadd.f32 %v1073_v31, %v864_v54  ;;  %v3289_v11 = vpop.f32.mrb[43].mxu1 }
 0x1f4   : > { %v1081_v50 = vpop.f32.mrb[40].mxu0 }
 0x1f5   : > { %v5008_v61 = vadd.f32 %v1076_v22, %v867_v2  ;;  %3599 = vmatmul.mubr.bf16.gmra.mrb[148].mxu1 %v5276_v47  ;;  %v3344_v19 = vpop.f32.mrb[41].mxu0 }
 0x1f6   : > { %3602 = vmatprep.mubr.msk.bf16.mxu1 %vm3887_vm0, %v3886_v23  ;;  %v1084_v13 = vpop.f32.mrb[42].mxu0 }
 0x1f7   : > { %v3345_v12 = vpop.f32.mrb[43].mxu0 }
 0x1f8   : > { %v871_v28 = vpop.f32.mrb[44].mxu1 }
 0x1f9   : > { %v872_v39 = vadd.f32 %v871_v28, %v4891_v59  ;;  %v3292_v36 = vpop.f32.mrb[45].mxu1  ;;  %3655 = vmatmul.mubr.bf16.gmra.mrb[148].mxu0 %v5277_v57 }
 0x1fa   : > { %v874_v62 = vpop.f32.mrb[46].mxu1  ;;  %3658 = vmatprep.mubr.msk.bf16.mxu0 %vm3887_vm0, %v3886_v23 }
 0x1fb   : > { %v875_v32 = vadd.f32 %v874_v62, %v4898_v7  ;;  %v5016_v53 = vadd.f32 %v1081_v50, %v872_v39  ;;  %v3293_v49 = vpop.f32.mrb[47].mxu1 }
 0x1fc   : > { %v1089_v60 = vpop.f32.mrb[44].mxu0 }
 0x1fd   : > { %v5020_v40 = vadd.f32 %v1084_v13, %v875_v32  ;;  %3603 = vmatmul.mubr.bf16.gmra.mrb[152].mxu1 %v4570_v46  ;;  %v3348_v0 = vpop.f32.mrb[45].mxu0 }
 0x1fe   : > { %3606 = vmatprep.mubr.msk.bf16.mxu1 %vm3887_vm0, %v3886_v23  ;;  %v1092_v59 = vpop.f32.mrb[46].mxu0 }
 0x1ff   : > { %v3349_v8 = vpop.f32.mrb[47].mxu0 }
 0x200   : > { %v879_v24 = vpop.f32.mrb[48].mxu1 }
 0x201   : > { %v880_v7 = vadd.f32 %v879_v24, %v4907_v42  ;;  %v3296_v41 = vpop.f32.mrb[49].mxu1  ;;  %3659 = vmatmul.mubr.bf16.gmra.mrb[152].mxu0 %v4564_v56 }
 0x202   : > { %v882_v52 = vpop.f32.mrb[50].mxu1  ;;  %3662 = vmatprep.mubr.msk.bf16.mxu0 %vm3887_vm0, %v3886_v23 }
 0x203   : > { %v883_v10 = vadd.f32 %v882_v52, %v4914_v26  ;;  %v5028_v5 = vadd.f32 %v1089_v60, %v880_v7  ;;  %v3297_v43 = vpop.f32.mrb[51].mxu1 }
 0x204   : > { %v1097_v15 = vpop.f32.mrb[48].mxu0 }
 0x205   : > { %v5032_v46 = vadd.f32 %v1092_v59, %v883_v10  ;;  %3607 = vmatmul.mubr.bf16.gmra.mrb[156].mxu1 %v4579_v33  ;;  %v3352_v44 = vpop.f32.mrb[49].mxu0 }
 0x206   : > { %3610 = vmatprep.mubr.msk.bf16.mxu1 %vm3887_vm0, %v3886_v23  ;;  %v1100_v42 = vpop.f32.mrb[50].mxu0 }
 0x207   : > { %v3353_v56 = vpop.f32.mrb[51].mxu0 }
 0x208   : > { %v887_v45 = vpop.f32.mrb[52].mxu1 }
 0x209   : > { %v888_v26 = vadd.f32 %v887_v45, %v4931_v38  ;;  %v3300_v3 = vpop.f32.mrb[53].mxu1  ;;  %3663 = vmatmul.mubr.bf16.gmra.mrb[156].mxu0 %v4626_v35 }
 0x20a   : > { %v890_v25 = vpop.f32.mrb[54].mxu1 }
 0x20b   : > { %v891_v55 = vadd.f32 %v890_v25, %v4934_v9  ;;  %v5040_v17 = vadd.f32 %v1097_v15, %v888_v26  ;;  %v3301_v31 = vpop.f32.mrb[55].mxu1 }
 0x20c   : > { %v1557_v4 = vpop.f32.mrb[52].mxu0 }
 0x20d   : > { %v5042_v33 = vadd.f32 %v1100_v42, %v891_v55  ;;  %3611 = vmatmul.mubr.bf16.gmra.mrb[160].mxu1 %v4632_v21  ;;  %v3424_v23 = vpop.f32.mrb[53].mxu0 }
 0x20e   : > { %v1560_v22 = vpop.f32.mrb[54].mxu0 }
 0x20f   : > { %v3425_v27 = vpop.f32.mrb[55].mxu0 }
 0x210   : > { %v1269_v37 = vpop.f32.mrb[56].mxu1 }
 0x211   : > { %v1340_v38 = vadd.f32 %v1269_v37, %v4944_v30  ;;  %v3372_v54 = vpop.f32.mrb[57].mxu1 }
 0x212   : > { %v1272_v63 = vpop.f32.mrb[58].mxu1 }
 0x213   : > { %v1341_v35 = vadd.f32 %v1272_v63, %v4948_v16  ;;  %v5047_v48 = vadd.f32 %v1557_v4, %v1340_v38  ;;  %v3373_v9 = vpop.f32.mrb[59].mxu1 }
 0x214   : > { %v1565_v11 = vpop.f32.mrb[56].mxu0 }
 0x215   : > { %v5049_v2 = vadd.f32 %v1560_v22, %v1341_v35  ;;  %v3428_v47 = vpop.f32.mrb[57].mxu0 }
 0x216   : > { %v1568_v50 = vpop.f32.mrb[58].mxu0 }
 0x217   : > { %v3429_v19 = vpop.f32.mrb[59].mxu0 }
 0x218   : > { %v1277_v21 = vpop.f32.mrb[60].mxu1 }
 0x219   : > { %v1342_v13 = vadd.f32 %v1277_v21, %v4956_v14  ;;  %v3376_v28 = vpop.f32.mrb[61].mxu1 }
 0x21a   : > { %v1280_v12 = vpop.f32.mrb[62].mxu1 }
 0x21b   : > { %v1343_v30 = vadd.f32 %v1280_v12, %v4960_v51  ;;  %v5053_v39 = vadd.f32 %v1565_v11, %v1342_v13  ;;  %v3377_v36 = vpop.f32.mrb[63].mxu1 }
 0x21c   : > { %v1573_v62 = vpop.f32.mrb[60].mxu0 }
 0x21d   : > { %v5055_v16 = vadd.f32 %v1568_v50, %v1343_v30  ;;  %v3432_v57 = vpop.f32.mrb[61].mxu0 }
 0x21e   : > { %v1576_v32 = vpop.f32.mrb[62].mxu0 }
 0x21f   : > { %v3433_v60 = vpop.f32.mrb[63].mxu0 }
 0x220   : > { %v1285_v49 = vpop.f32.mrb[64].mxu1 }
 0x221   : > { %v1344_v0 = vadd.f32 %v1285_v49, %v4968_v18  ;;  %v3380_v59 = vpop.f32.mrb[65].mxu1 }
 0x222   : > { %v1288_v24 = vpop.f32.mrb[66].mxu1 }
 0x223   : > { %v1345_v14 = vadd.f32 %v1288_v24, %v4972_v20  ;;  %v5059_v8 = vadd.f32 %v1573_v62, %v1344_v0  ;;  %v3381_v7 = vpop.f32.mrb[67].mxu1 }
 0x224   : > { %v1581_v41 = vpop.f32.mrb[64].mxu0 }
 0x225   : > { %v5061_v51 = vadd.f32 %v1576_v32, %v1345_v14  ;;  %v3436_v52 = vpop.f32.mrb[65].mxu0 }
 0x226   : > { %v1584_v10 = vpop.f32.mrb[66].mxu0 }
 0x227   : > { %v3437_v15 = vpop.f32.mrb[67].mxu0 }
 0x228   : > { %v1293_v43 = vpop.f32.mrb[68].mxu1 }
 0x229   : > { %v1346_v44 = vadd.f32 %v1293_v43, %v4980_v1  ;;  %v3384_v42 = vpop.f32.mrb[69].mxu1 }
 0x22a   : > { %v1296_v45 = vpop.f32.mrb[70].mxu1 }
 0x22b   : > { %v1347_v18 = vadd.f32 %v1296_v45, %v4984_v6  ;;  %v5065_v56 = vadd.f32 %v1581_v41, %v1346_v44  ;;  %v3385_v26 = vpop.f32.mrb[71].mxu1 }
 0x22c   : > { %v1589_v3 = vpop.f32.mrb[68].mxu0 }
 0x22d   : > { %v5067_v20 = vadd.f32 %v1584_v10, %v1347_v18  ;;  %v3440_v25 = vpop.f32.mrb[69].mxu0 }
 0x22e   : > { %v1592_v55 = vpop.f32.mrb[70].mxu0 }
 0x22f   : > { %v3441_v4 = vpop.f32.mrb[71].mxu0 }
 0x230   : > { %v1301_v31 = vpop.f32.mrb[72].mxu1 }
 0x231   : > { %v1348_v23 = vadd.f32 %v1301_v31, %v4992_v34  ;;  %v3388_v22 = vpop.f32.mrb[73].mxu1 }
 0x232   : > { %v1304_v37 = vpop.f32.mrb[74].mxu1 }
 0x233   : > { %v1349_v1 = vadd.f32 %v1304_v37, %v4996_v29  ;;  %v5071_v27 = vadd.f32 %v1589_v3, %v1348_v23  ;;  %v3389_v38 = vpop.f32.mrb[75].mxu1 }
 0x234   : > { %v1597_v54 = vpop.f32.mrb[72].mxu0 }
 0x235   : > { %v5073_v6 = vadd.f32 %v1592_v55, %v1349_v1  ;;  %v3444_v63 = vpop.f32.mrb[73].mxu0 }
 0x236   : > { %v1600_v35 = vpop.f32.mrb[74].mxu0 }
 0x237   : > { %v3445_v11 = vpop.f32.mrb[75].mxu0 }
 0x238   : > { %v1309_v9 = vpop.f32.mrb[76].mxu1 }
 0x239   : > { %v1350_v47 = vadd.f32 %v1309_v9, %v5004_v58  ;;  %v3392_v50 = vpop.f32.mrb[77].mxu1 }
 0x23a   : > { %v1312_v21 = vpop.f32.mrb[78].mxu1 }
 0x23b   : > { %v1351_v34 = vadd.f32 %v1312_v21, %v5008_v61  ;;  %v5077_v19 = vadd.f32 %v1597_v54, %v1350_v47  ;;  %v3393_v13 = vpop.f32.mrb[79].mxu1 }
 0x23c   : > { %v1605_v28 = vpop.f32.mrb[76].mxu0 }
 0x23d   : > { %v5079_v29 = vadd.f32 %v1600_v35, %v1351_v34  ;;  %v3448_v12 = vpop.f32.mrb[77].mxu0 }
 0x23e   : > { %v1608_v30 = vpop.f32.mrb[78].mxu0 }
 0x23f   : > { %v3449_v62 = vpop.f32.mrb[79].mxu0 }
 0x240   : > { %v1317_v36 = vpop.f32.mrb[80].mxu1 }
 0x241   : > { %v1352_v57 = vadd.f32 %v1317_v36, %v5016_v53  ;;  %v3396_v32 = vpop.f32.mrb[81].mxu1 }
 0x242   : > { %v1320_v49 = vpop.f32.mrb[82].mxu1 }
 0x243   : > { %v1353_v58 = vadd.f32 %v1320_v49, %v5020_v40  ;;  %v5083_v60 = vadd.f32 %v1605_v28, %v1352_v57  ;;  %v3397_v0 = vpop.f32.mrb[83].mxu1 }
 0x244   : > { %v1613_v59 = vpop.f32.mrb[80].mxu0 }
 0x245   : > { %v5085_v61 = vadd.f32 %v1608_v30, %v1353_v58  ;;  %v3452_v24 = vpop.f32.mrb[81].mxu0 }
 0x246   : > { %v1616_v14 = vpop.f32.mrb[82].mxu0 }
 0x247   : > { %v3453_v41 = vpop.f32.mrb[83].mxu0 }
 0x248   : > { %v1325_v7 = vpop.f32.mrb[84].mxu1 }
 0x249   : > { %v1354_v52 = vadd.f32 %v1325_v7, %v5028_v5  ;;  %v3400_v10 = vpop.f32.mrb[85].mxu1 }
 0x24a   : > { %v1328_v43 = vpop.f32.mrb[86].mxu1 }
 0x24b   : > { %v1355_v53 = vadd.f32 %v1328_v43, %v5032_v46  ;;  %v5089_v15 = vadd.f32 %v1613_v59, %v1354_v52  ;;  %v3401_v44 = vpop.f32.mrb[87].mxu1 }
 0x24c   : > { %v1621_v42 = vpop.f32.mrb[84].mxu0 }
 0x24d   : > { %v5091_v40 = vadd.f32 %v1616_v14, %v1355_v53  ;;  %v3456_v45 = vpop.f32.mrb[85].mxu0 }
 0x24e   : > { %v1624_v18 = vpop.f32.mrb[86].mxu0 }
 0x24f   : > { %v3457_v3 = vpop.f32.mrb[87].mxu0 }
 0x250   : > { %v1333_v26 = vpop.f32.mrb[88].mxu1 }
 0x251   : > { %v1356_v25 = vadd.f32 %v1333_v26, %v5040_v17  ;;  %v3404_v55 = vpop.f32.mrb[89].mxu1 }
 0x252   : > { %v1336_v31 = vpop.f32.mrb[90].mxu1 }
 0x253   : > { %v1357_v5 = vadd.f32 %v1336_v31, %v5042_v33  ;;  %v5095_v4 = vadd.f32 %v1621_v42, %v1356_v25  ;;  %v3405_v23 = vpop.f32.mrb[91].mxu1 }
 0x254   : > { %v2013_v22 = vpop.f32.mrb[88].mxu0 }
 0x255   : > { %v5097_v46 = vadd.f32 %v1624_v18, %v1357_v5  ;;  %v3528_v37 = vpop.f32.mrb[89].mxu0 }
 0x256   : > { %v2016_v1 = vpop.f32.mrb[90].mxu0 }
 0x257   : > { %v3529_v54 = vpop.f32.mrb[91].mxu0 }
 0x258   : > { %v1777_v38 = vpop.f32.mrb[92].mxu1 }
 0x259   : > { %v1848_v63 = vadd.f32 %v1777_v38, %v5047_v48  ;;  %v3476_v35 = vpop.f32.mrb[93].mxu1 }
 0x25a   : > { %v1780_v9 = vpop.f32.mrb[94].mxu1 }
 0x25b   : > { %v1849_v17 = vadd.f32 %v1780_v9, %v5049_v2  ;;  %v5101_v11 = vadd.f32 %v2013_v22, %v1848_v63  ;;  %v3477_v47 = vpop.f32.mrb[95].mxu1 }
 0x25c   : > { %v2021_v50 = vpop.f32.mrb[92].mxu0 }
 0x25d   : > { %v5103_v33 = vadd.f32 %v2016_v1, %v1849_v17  ;;  %v3532_v21 = vpop.f32.mrb[93].mxu0 }
 0x25e   : > { %v2024_v34 = vpop.f32.mrb[94].mxu0 }
 0x25f   : > { %v3533_v28 = vpop.f32.mrb[95].mxu0 }
 0x260   : > { %v1785_v13 = vpop.f32.mrb[96].mxu1 }
 0x261   : > { %v1850_v12 = vadd.f32 %v1785_v13, %v5053_v39  ;;  %v3480_v30 = vpop.f32.mrb[97].mxu1 }
 0x262   : > { %v1788_v36 = vpop.f32.mrb[98].mxu1 }
 0x263   : > { %v1851_v48 = vadd.f32 %v1788_v36, %v5055_v16  ;;  %v5107_v62 = vadd.f32 %v2021_v50, %v1850_v12  ;;  %v3481_v57 = vpop.f32.mrb[99].mxu1 }
 0x264   : > { %v2029_v32 = vpop.f32.mrb[96].mxu0 }
 0x265   : > { %v5109_v2 = vadd.f32 %v2024_v34, %v1851_v48  ;;  %v3536_v49 = vpop.f32.mrb[97].mxu0 }
 0x266   : > { %v2032_v58 = vpop.f32.mrb[98].mxu0 }
 0x267   : > { %v3537_v59 = vpop.f32.mrb[99].mxu0 }
 0x268   : > { %v1793_v0 = vpop.f32.mrb[100].mxu1 }
 0x269   : > { %v1852_v24 = vadd.f32 %v1793_v0, %v5059_v8  ;;  %v3484_v14 = vpop.f32.mrb[101].mxu1 }
 0x26a   : > { %v1796_v7 = vpop.f32.mrb[102].mxu1 }
 0x26b   : > { %v1853_v39 = vadd.f32 %v1796_v7, %v5061_v51  ;;  %v5113_v41 = vadd.f32 %v2029_v32, %v1852_v24  ;;  %v3485_v52 = vpop.f32.mrb[103].mxu1 }
 0x26c   : > { %v2037_v10 = vpop.f32.mrb[100].mxu0 }
 0x26d   : > { %v5115_v16 = vadd.f32 %v2032_v58, %v1853_v39  ;;  %v3540_v43 = vpop.f32.mrb[101].mxu0 }
 0x26e   : > { %v2040_v53 = vpop.f32.mrb[102].mxu0 }
 0x26f   : > { %v3541_v42 = vpop.f32.mrb[103].mxu0 }
 0x270   : > { %v1801_v44 = vpop.f32.mrb[104].mxu1 }
 0x271   : > { %v1854_v45 = vadd.f32 %v1801_v44, %v5065_v56  ;;  %v3488_v18 = vpop.f32.mrb[105].mxu1 }
 0x272   : > { %v1804_v26 = vpop.f32.mrb[106].mxu1 }
 0x273   : > { %v1855_v8 = vadd.f32 %v1804_v26, %v5067_v20  ;;  %v5119_v3 = vadd.f32 %v2037_v10, %v1854_v45  ;;  %v3489_v25 = vpop.f32.mrb[107].mxu1 }
 0x274   : > { %v2045_v55 = vpop.f32.mrb[104].mxu0 }
 0x275   : > { %v5121_v51 = vadd.f32 %v2040_v53, %v1855_v8  ;;  %v3544_v31 = vpop.f32.mrb[105].mxu0 }
 0x276   : > { %v2048_v5 = vpop.f32.mrb[106].mxu0 }
 0x277   : > { %v3545_v22 = vpop.f32.mrb[107].mxu0 }
 0x278   : > { %v1809_v23 = vpop.f32.mrb[108].mxu1 }
 0x279   : > { %v1856_v37 = vadd.f32 %v1809_v23, %v5071_v27  ;;  %v3492_v1 = vpop.f32.mrb[109].mxu1 }
 0x27a   : > { %v1812_v38 = vpop.f32.mrb[110].mxu1 }
 0x27b   : > { %v1857_v56 = vadd.f32 %v1812_v38, %v5073_v6  ;;  %v5125_v54 = vadd.f32 %v2045_v55, %v1856_v37  ;;  %v3493_v63 = vpop.f32.mrb[111].mxu1 }
 0x27c   : > { %v2053_v35 = vpop.f32.mrb[108].mxu0 }
 0x27d   : > { %v5127_v20 = vadd.f32 %v2048_v5, %v1857_v56  ;;  %v3548_v9 = vpop.f32.mrb[109].mxu0 }
 0x27e   : > { %v2056_v17 = vpop.f32.mrb[110].mxu0 }
 0x27f   : > { %v3549_v50 = vpop.f32.mrb[111].mxu0 }
 0x280   : > { %v1817_v47 = vpop.f32.mrb[112].mxu1 }
 0x281   : > { %v1858_v21 = vadd.f32 %v1817_v47, %v5077_v19  ;;  %v3496_v34 = vpop.f32.mrb[113].mxu1 }
 0x282   : > { %v1820_v13 = vpop.f32.mrb[114].mxu1 }
 0x283   : > { %v1859_v27 = vadd.f32 %v1820_v13, %v5079_v29  ;;  %v5131_v28 = vadd.f32 %v2053_v35, %v1858_v21  ;;  %v3497_v12 = vpop.f32.mrb[115].mxu1 }
 0x284   : > { %v2061_v30 = vpop.f32.mrb[112].mxu0 }
 0x285   : > { %v5133_v6 = vadd.f32 %v2056_v17, %v1859_v27  ;;  %v3552_v36 = vpop.f32.mrb[113].mxu0 }
 0x286   : > { %v2064_v48 = vpop.f32.mrb[114].mxu0 }
 0x287   : > { %v3553_v32 = vpop.f32.mrb[115].mxu0 }
 0x288   : > { %v1825_v57 = vpop.f32.mrb[116].mxu1 }
 0x289   : > { %v1860_v49 = vadd.f32 %v1825_v57, %v5083_v60  ;;  %v3500_v58 = vpop.f32.mrb[117].mxu1 }
 0x28a   : > { %v1828_v0 = vpop.f32.mrb[118].mxu1 }
 0x28b   : > { %v1861_v19 = vadd.f32 %v1828_v0, %v5085_v61  ;;  %v5137_v59 = vadd.f32 %v2061_v30, %v1860_v49  ;;  %v3501_v29 = vpop.f32.mrb[119].mxu1 }
 0x28c   : > { %v2069_v14 = vpop.f32.mrb[116].mxu0 }
 0x28d   : > { %v5139_v24 = vadd.f32 %v2064_v48, %v1861_v19  ;;  %v3556_v7 = vpop.f32.mrb[117].mxu0 }
 0x28e   : > { %v2072_v39 = vpop.f32.mrb[118].mxu0 }
 0x28f   : > { %v3557_v10 = vpop.f32.mrb[119].mxu0 }
 0x290   : > { %v1833_v52 = vpop.f32.mrb[120].mxu1 }
 0x291   : > { %v1862_v43 = vadd.f32 %v1833_v52, %v5089_v15  ;;  %v3504_v53 = vpop.f32.mrb[121].mxu1 }
 0x292   : > { %v1836_v44 = vpop.f32.mrb[122].mxu1 }
 0x293   : > { %v1863_v60 = vadd.f32 %v1836_v44, %v5091_v40  ;;  %v5143_v42 = vadd.f32 %v2069_v14, %v1862_v43  ;;  %v3505_v61 = vpop.f32.mrb[123].mxu1 }
 0x294   : > { %v2077_v18 = vpop.f32.mrb[120].mxu0 }
 0x295   : > { %v5145_v45 = vadd.f32 %v2072_v39, %v1863_v60  ;;  %v3560_v26 = vpop.f32.mrb[121].mxu0 }
 0x296   : > { %v2080_v8 = vpop.f32.mrb[122].mxu0 }
 0x297   : > { %v3561_v55 = vpop.f32.mrb[123].mxu0 }
 0x298   : > { %v1841_v25 = vpop.f32.mrb[124].mxu1 }
 0x299   : > { %v1864_v31 = vadd.f32 %v1841_v25, %v5095_v4  ;;  %v3508_v5 = vpop.f32.mrb[125].mxu1 }
 0x29a   : > { %v1844_v15 = vpop.f32.mrb[126].mxu1 }
 0x29b   : > { %v1865_v23 = vadd.f32 %v1844_v15, %v5097_v46  ;;  %v5150_v40 = vadd.f32 %v2077_v18, %v1864_v31  ;;  %v3509_v22 = vpop.f32.mrb[127].mxu1  ;;  %v5159_v46 = vld [vmem:[%s5236_s2] ss:$0 sm:$0xff] }
 0x29c   : > { %v2521_v1 = vpop.f32.mrb[124].mxu0 }
 0x29d   : > { %v5153_v37 = vadd.f32 %v2080_v8, %v1865_v23  ;;  %v3632_v38 = vpop.f32.mrb[125].mxu0 }
 0x29e   : > { %v2524_v56 = vpop.f32.mrb[126].mxu0 }
 0x29f   : > { %v3633_v35 = vpop.f32.mrb[127].mxu0 }
 0x2a0   : > { %v2301_v63 = vpop.f32.mrb[128].mxu1 }
 0x2a1   : > { %v2372_v9 = vadd.f32 %v2301_v63, %v5101_v11  ;;  %v3580_v4 = vpop.f32.mrb[129].mxu1 }
 0x2a2   : > { %v2304_v17 = vpop.f32.mrb[130].mxu1 }
 0x2a3   : > { %v2373_v47 = vadd.f32 %v2304_v17, %v5103_v33  ;;  %v2592_v50 = vadd.f32 %v2521_v1, %v2372_v9  ;;  %v3581_v21 = vpop.f32.mrb[131].mxu1 }
 0x2a4   : > { %v2529_v27 = vpop.f32.mrb[128].mxu0 }
 0x2a5   : > { %v2617_v34 = vadd.f32 %v5159_v46, %v2592_v50  ;;  %v2593_v13 = vadd.f32 %v2524_v56, %v2373_v47  ;;  %v3636_v12 = vpop.f32.mrb[129].mxu0 }
 0x2a6   : > { %v2532_v33 = vpop.f32.mrb[130].mxu0 }
 0x2a7   : > { %vm2635_vm7 = vcmp.ge.f32.partialorder %v2617_v34, 0.0  ;;  %v2653_v11 = vmul.f32 0.2, %v2617_v34  ;;  %v2618_v30 = vadd.f32 %v5159_v46, %v2593_v13  ;;  %v3637_v48 = vpop.f32.mrb[131].mxu0 }
 0x2a8   : > { %v2309_v36 = vpop.f32.mrb[132].mxu1 }
 0x2a9   : > { %v2671_v57 = vsel %vm2635_vm7, %v2617_v34, %v2653_v11  ;;  %vm2636_vm8 = vcmp.ge.f32.partialorder %v2618_v30, 0.0  ;;  %v2654_v32 = vmul.f32 0.2, %v2618_v30  ;;  %v2374_v49 = vadd.f32 %v2309_v36, %v5107_v62  ;;  %v3584_v58 = vpop.f32.mrb[133].mxu1 }
 0x2aa   : > { %2689 = vst [vmem:[%s5166_s8] sm:$0xff] %v2671_v57  ;;  %v2312_v0 = vpop.f32.mrb[134].mxu1 }
 0x2ab   : > { %v2672_v19 = vsel %vm2636_vm8, %v2618_v30, %v2654_v32  ;;  %v2375_v29 = vadd.f32 %v2312_v0, %v5109_v2  ;;  %v2594_v14 = vadd.f32 %v2529_v27, %v2374_v49  ;;  %v3585_v7 = vpop.f32.mrb[135].mxu1 }
 0x2ac   : > { %2690 = vst [vmem:[%s5166_s8 + $0x8] sm:$0xff] %v2672_v19  ;;  %v2537_v10 = vpop.f32.mrb[132].mxu0 }
 0x2ad   : > { %v2619_v39 = vadd.f32 %v5159_v46, %v2594_v14  ;;  %v2595_v52 = vadd.f32 %v2532_v33, %v2375_v29  ;;  %v3640_v43 = vpop.f32.mrb[133].mxu0 }
 0x2ae   : > { %v2540_v44 = vpop.f32.mrb[134].mxu0 }
 0x2af   : > { %vm2637_vm9 = vcmp.ge.f32.partialorder %v2619_v39, 0.0  ;;  %v2655_v53 = vmul.f32 0.2, %v2619_v39  ;;  %v2620_v62 = vadd.f32 %v5159_v46, %v2595_v52  ;;  %v3641_v61 = vpop.f32.mrb[135].mxu0 }
 0x2b0   : > { %v2317_v60 = vpop.f32.mrb[136].mxu1 }
 0x2b1   : > { %v2673_v18 = vsel %vm2637_vm9, %v2619_v39, %v2655_v53  ;;  %vm2638_vm10 = vcmp.ge.f32.partialorder %v2620_v62, 0.0  ;;  %v2656_v2 = vmul.f32 0.2, %v2620_v62  ;;  %v2376_v26 = vadd.f32 %v2317_v60, %v5113_v41  ;;  %v3588_v8 = vpop.f32.mrb[137].mxu1 }
 0x2b2   : > { %2691 = vst [vmem:[%s5166_s8 + $0x10] sm:$0xff] %v2673_v18  ;;  %v2320_v25 = vpop.f32.mrb[138].mxu1 }
 0x2b3   : > { %v2674_v55 = vsel %vm2638_vm10, %v2620_v62, %v2656_v2  ;;  %v2377_v31 = vadd.f32 %v2320_v25, %v5115_v16  ;;  %v2596_v5 = vadd.f32 %v2537_v10, %v2376_v26  ;;  %v3589_v15 = vpop.f32.mrb[139].mxu1 }
 0x2b4   : > { %2692 = vst [vmem:[%s5166_s8 + $0x18] sm:$0xff] %v2674_v55  ;;  %v2545_v1 = vpop.f32.mrb[136].mxu0 }
 0x2b5   : > { %v2621_v23 = vadd.f32 %v5159_v46, %v2596_v5  ;;  %v2597_v22 = vadd.f32 %v2540_v44, %v2377_v31  ;;  %v3644_v38 = vpop.f32.mrb[137].mxu0 }
 0x2b6   : > { %v2548_v63 = vpop.f32.mrb[138].mxu0 }
 0x2b7   : > { %vm2639_vm11 = vcmp.ge.f32.partialorder %v2621_v23, 0.0  ;;  %v2657_v56 = vmul.f32 0.2, %v2621_v23  ;;  %v2622_v41 = vadd.f32 %v5159_v46, %v2597_v22  ;;  %v3645_v9 = vpop.f32.mrb[139].mxu0 }
 0x2b8   : > { %v2325_v35 = vpop.f32.mrb[140].mxu1 }
 0x2b9   : > { %v2675_v4 = vsel %vm2639_vm11, %v2621_v23, %v2657_v56  ;;  %vm2640_vm12 = vcmp.ge.f32.partialorder %v2622_v41, 0.0  ;;  %v2658_v16 = vmul.f32 0.2, %v2622_v41  ;;  %v2378_v17 = vadd.f32 %v2325_v35, %v5119_v3  ;;  %v3592_v47 = vpop.f32.mrb[141].mxu1 }
 0x2ba   : > { %2693 = vst [vmem:[%s5166_s8 + $0x20] sm:$0xff] %v2675_v4  ;;  %v2328_v50 = vpop.f32.mrb[142].mxu1 }
 0x2bb   : > { %v2676_v21 = vsel %vm2640_vm12, %v2622_v41, %v2658_v16  ;;  %v2379_v34 = vadd.f32 %v2328_v50, %v5121_v51  ;;  %v2598_v13 = vadd.f32 %v2545_v1, %v2378_v17  ;;  %v3593_v27 = vpop.f32.mrb[143].mxu1 }
 0x2bc   : > { %2694 = vst [vmem:[%s5166_s8 + $0x28] sm:$0xff] %v2676_v21  ;;  %v2553_v30 = vpop.f32.mrb[140].mxu0 }
 0x2bd   : > { %v2623_v12 = vadd.f32 %v5159_v46, %v2598_v13  ;;  %v2599_v11 = vadd.f32 %v2548_v63, %v2379_v34  ;;  %v3648_v33 = vpop.f32.mrb[141].mxu0 }
 0x2be   : > { %v2556_v48 = vpop.f32.mrb[142].mxu0 }
 0x2bf   : > { %vm2641_vm13 = vcmp.ge.f32.partialorder %v2623_v12, 0.0  ;;  %v2659_v36 = vmul.f32 0.2, %v2623_v12  ;;  %v2624_v3 = vadd.f32 %v5159_v46, %v2599_v11  ;;  %v3649_v32 = vpop.f32.mrb[143].mxu0 }
 0x2c0   : > { %v2333_v57 = vpop.f32.mrb[144].mxu1 }
 0x2c1   : > { %v2677_v49 = vsel %vm2641_vm13, %v2623_v12, %v2659_v36  ;;  %vm2642_vm14 = vcmp.ge.f32.partialorder %v2624_v3, 0.0  ;;  %v2660_v51 = vmul.f32 0.2, %v2624_v3  ;;  %v2380_v58 = vadd.f32 %v2333_v57, %v5125_v54  ;;  %v3596_v0 = vpop.f32.mrb[145].mxu1 }
 0x2c2   : > { %2695 = vst [vmem:[%s5166_s8 + $0x30] sm:$0xff] %v2677_v49  ;;  %v2336_v19 = vpop.f32.mrb[146].mxu1 }
 0x2c3   : > { %v2678_v29 = vsel %vm2642_vm14, %v2624_v3, %v2660_v51  ;;  %v2381_v14 = vadd.f32 %v2336_v19, %v5127_v20  ;;  %v2600_v7 = vadd.f32 %v2553_v30, %v2380_v58  ;;  %v3597_v39 = vpop.f32.mrb[147].mxu1 }
 0x2c4   : > { %2696 = vst [vmem:[%s5166_s8 + $0x38] sm:$0xff] %v2678_v29  ;;  %v2561_v43 = vpop.f32.mrb[144].mxu0 }
 0x2c5   : > { %v2625_v52 = vadd.f32 %v5159_v46, %v2600_v7  ;;  %v2601_v10 = vadd.f32 %v2556_v48, %v2381_v14  ;;  %v3652_v53 = vpop.f32.mrb[145].mxu0 }
 0x2c6   : > { %v2564_v44 = vpop.f32.mrb[146].mxu0 }
 0x2c7   : > { %vm2643_vm15 = vcmp.ge.f32.partialorder %v2625_v52, 0.0  ;;  %v2661_v62 = vmul.f32 0.2, %v2625_v52  ;;  %v2626_v54 = vadd.f32 %v5159_v46, %v2601_v10  ;;  %v3653_v61 = vpop.f32.mrb[147].mxu0 }
 0x2c8   : > { %v2341_v60 = vpop.f32.mrb[148].mxu1 }
 0x2c9   : > { %v2679_v18 = vsel %vm2643_vm15, %v2625_v52, %v2661_v62  ;;  %vm2644_vm0 = vcmp.ge.f32.partialorder %v2626_v54, 0.0  ;;  %v2662_v20 = vmul.f32 0.2, %v2626_v54  ;;  %v2382_v2 = vadd.f32 %v2341_v60, %v5131_v28  ;;  %v3600_v26 = vpop.f32.mrb[149].mxu1 }
 0x2ca   : > { %2697 = vst [vmem:[%s5166_s8 + $0x40] sm:$0xff] %v2679_v18  ;;  %v2344_v8 = vpop.f32.mrb[150].mxu1 }
 0x2cb   : > { %v2680_v25 = vsel %vm2644_vm0, %v2626_v54, %v2662_v20  ;;  %v2383_v55 = vadd.f32 %v2344_v8, %v5133_v6  ;;  %v2602_v31 = vadd.f32 %v2561_v43, %v2382_v2  ;;  %v3601_v5 = vpop.f32.mrb[151].mxu1 }
 0x2cc   : > { %2698 = vst [vmem:[%s5166_s8 + $0x48] sm:$0xff] %v2680_v25  ;;  %v2569_v22 = vpop.f32.mrb[148].mxu0 }
 0x2cd   : > { %v2627_v15 = vadd.f32 %v5159_v46, %v2602_v31  ;;  %v2603_v23 = vadd.f32 %v2564_v44, %v2383_v55  ;;  %v3656_v1 = vpop.f32.mrb[149].mxu0 }
 0x2ce   : > { %v2572_v56 = vpop.f32.mrb[150].mxu0 }
 0x2cf   : > { %vm2645_vm1 = vcmp.ge.f32.partialorder %v2627_v15, 0.0  ;;  %v2663_v38 = vmul.f32 0.2, %v2627_v15  ;;  %v2628_v28 = vadd.f32 %v5159_v46, %v2603_v23  ;;  %v3657_v63 = vpop.f32.mrb[151].mxu0 }
 0x2d0   : > { %v2349_v41 = vpop.f32.mrb[152].mxu1 }
 0x2d1   : > { %v2681_v35 = vsel %vm2645_vm1, %v2627_v15, %v2663_v38  ;;  %vm2646_vm2 = vcmp.ge.f32.partialorder %v2628_v28, 0.0  ;;  %v2664_v6 = vmul.f32 0.2, %v2628_v28  ;;  %v2384_v9 = vadd.f32 %v2349_v41, %v5137_v59  ;;  %v3604_v4 = vpop.f32.mrb[153].mxu1 }
 0x2d2   : > { %2699 = vst [vmem:[%s5166_s8 + $0x50] sm:$0xff] %v2681_v35  ;;  %v2352_v16 = vpop.f32.mrb[154].mxu1 }
 0x2d3   : > { %v2682_v17 = vsel %vm2646_vm2, %v2628_v28, %v2664_v6  ;;  %v2385_v47 = vadd.f32 %v2352_v16, %v5139_v24  ;;  %v2604_v50 = vadd.f32 %v2569_v22, %v2384_v9  ;;  %v3605_v21 = vpop.f32.mrb[155].mxu1 }
 0x2d4   : > { %2700 = vst [vmem:[%s5166_s8 + $0x58] sm:$0xff] %v2682_v17  ;;  %v2577_v27 = vpop.f32.mrb[152].mxu0 }
 0x2d5   : > { %v2629_v34 = vadd.f32 %v5159_v46, %v2604_v50  ;;  %v2605_v13 = vadd.f32 %v2572_v56, %v2385_v47  ;;  %v3660_v12 = vpop.f32.mrb[153].mxu0 }
 0x2d6   : > { %v2580_v30 = vpop.f32.mrb[154].mxu0 }
 0x2d7   : > { %vm2647_vm3 = vcmp.ge.f32.partialorder %v2629_v34, 0.0  ;;  %v2665_v11 = vmul.f32 0.2, %v2629_v34  ;;  %v2630_v59 = vadd.f32 %v5159_v46, %v2605_v13  ;;  %v3661_v36 = vpop.f32.mrb[155].mxu0 }
 0x2d8   : > { %v2357_v33 = vpop.f32.mrb[156].mxu1 }
 0x2d9   : > { %v2683_v3 = vsel %vm2647_vm3, %v2629_v34, %v2665_v11  ;;  %vm2648_vm4 = vcmp.ge.f32.partialorder %v2630_v59, 0.0  ;;  %v2666_v24 = vmul.f32 0.2, %v2630_v59  ;;  %v2386_v48 = vadd.f32 %v2357_v33, %v5143_v42  ;;  %v3608_v57 = vpop.f32.mrb[157].mxu1 }
 0x2da   : > { %2701 = vst [vmem:[%s5166_s8 + $0x60] sm:$0xff] %v2683_v3  ;;  %v2360_v32 = vpop.f32.mrb[158].mxu1 }
 0x2db   : > { %v2684_v49 = vsel %vm2648_vm4, %v2630_v59, %v2666_v24  ;;  %v2387_v51 = vadd.f32 %v2360_v32, %v5145_v45  ;;  %v2606_v58 = vadd.f32 %v2577_v27, %v2386_v48  ;;  %v3609_v0 = vpop.f32.mrb[159].mxu1 }
 0x2dc   : > { %2702 = vst [vmem:[%s5166_s8 + $0x68] sm:$0xff] %v2684_v49  ;;  %v2585_v14 = vpop.f32.mrb[156].mxu0 }
 0x2dd   : > { %v2631_v19 = vadd.f32 %v5159_v46, %v2606_v58  ;;  %v2607_v29 = vadd.f32 %v2580_v30, %v2387_v51  ;;  %v3664_v7 = vpop.f32.mrb[157].mxu0 }
 0x2de   : > { %v2588_v52 = vpop.f32.mrb[158].mxu0 }
 0x2df   : > { %vm2649_vm5 = vcmp.ge.f32.partialorder %v2631_v19, 0.0  ;;  %v2667_v39 = vmul.f32 0.2, %v2631_v19  ;;  %v2632_v42 = vadd.f32 %v5159_v46, %v2607_v29  ;;  %v3665_v43 = vpop.f32.mrb[159].mxu0 }
 0x2e0   : > { %v2365_v10 = vpop.f32.mrb[160].mxu1 }
 0x2e1   : > { %v2685_v53 = vsel %vm2649_vm5, %v2631_v19, %v2667_v39  ;;  %vm2650_vm6 = vcmp.ge.f32.partialorder %v2632_v42, 0.0  ;;  %v2668_v45 = vmul.f32 0.2, %v2632_v42  ;;  %v2388_v62 = vadd.f32 %v2365_v10, %v5150_v40  ;;  %v3612_v54 = vpop.f32.mrb[161].mxu1 }
 0x2e2   : > { %2703 = vst [vmem:[%s5166_s8 + $0x70] sm:$0xff] %v2685_v53  ;;  %v2368_v44 = vpop.f32.mrb[162].mxu1 }
 0x2e3   : > { %v2686_v60 = vsel %vm2650_vm6, %v2632_v42, %v2668_v45  ;;  %v2389_v61 = vadd.f32 %v2368_v44, %v5153_v37  ;;  %v2608_v18 = vadd.f32 %v2585_v14, %v2388_v62  ;;  %v3613_v20 = vpop.f32.mrb[163].mxu1 }
 0x2e4   : > { %2704 = vst [vmem:[%s5166_s8 + $0x78] sm:$0xff] %v2686_v60 }
 0x2e5   : > { %v2633_v2 = vadd.f32 %v5159_v46, %v2608_v18  ;;  %v2609_v26 = vadd.f32 %v2588_v52, %v2389_v61 }
 0x2e7   : > { %vm2651_vm7 = vcmp.ge.f32.partialorder %v2633_v2, 0.0  ;;  %v2669_v8 = vmul.f32 0.2, %v2633_v2  ;;  %v2634_v25 = vadd.f32 %v5159_v46, %v2609_v26 }
 0x2e9   : > { %v2687_v55 = vsel %vm2651_vm7, %v2633_v2, %v2669_v8  ;;  %vm2652_vm8 = vcmp.ge.f32.partialorder %v2634_v25, 0.0  ;;  %v2670_v40 = vmul.f32 0.2, %v2634_v25 }
 0x2ea   : > { %2705 = vst [vmem:[%s5166_s8 + $0x80] sm:$0xff] %v2687_v55 }
 0x2eb   : > { %v2688_v31 = vsel %vm2652_vm8, %v2634_v25, %v2670_v40 }
 0x2ec   : > { %2706 = vst [vmem:[%s5166_s8 + $0x88] sm:$0xff] %v2688_v31 }
 0x2ed PF: > { %s13_s16 = sadd.s32 1, %s3884_s16   ;;  %s5278_s12 = smov %s3876_s14 }
 0x2ee   : > { %p10_p7 = scmp.ge.s32.totalorder %s13_s16, 6   ;;  %s5279_s13 = smov %s3880_s15 }
 0x2ef   : > { %s5280_s14 = smov %s5283_s17  ;;  %s5281_s15 = smov %s5287_s18 }
 0x2f0   :  { %12 = sbr.rel (!%p10_p7) target bundleno = 3 (0x3), region = 77 }

</bundles_post_ra>
